<compile_context>
chip_gen: v5e
topology: v5e:2x2
jax: 0.10.0
libtpu: 0.0.40
codegen_flags: <defaults>
</compile_context>

<pallas_src>
import jax
import jax.numpy as jnp
from jax import lax
from jax.experimental import pallas as pl
from jax.experimental.pallas import tpu as pltpu

_HIGHEST = jax.lax.Precision.HIGHEST


def _grid_sample_kernel(off_ref, imgT_ref, out_ref):
    """One batch element per grid step.

    off_ref  : SMEM (B, 3)        per-batch offsets as stacked by the module
                                  (channel 0 samples image W, 1 -> H, 2 -> D)
    imgT_ref : VMEM (1, W, D*H)   transposed volume, rows = w, cols = (d,h) d-major
    out_ref  : VMEM (1, D, H*W)   output, rows = i (out depth), cols = (j,k) j-major
    """
    f32 = jnp.float32
    _, W, DH = imgT_ref.shape
    _, D, HW = out_ref.shape
    H = DH // D          # output spatial size == input spatial size for this module

    b = pl.program_id(0)
    off_x = off_ref[b, 0]    # grid channel 0 (the module's grid_z) -> sampled image W
    off_y = off_ref[b, 1]    # grid channel 1 (grid_y)              -> sampled image H
    off_z = off_ref[b, 2]    # grid channel 2 (grid_x)              -> sampled image D

    def lin(idx, n_out):
        # torch.linspace(-1, 1, n); torch.linspace(-1, 1, 1) == [-1]
        if n_out > 1:
            return -1.0 + idx * (2.0 / (n_out - 1))
        return jnp.full_like(idx, -1.0)

    # ---- Wx (D, W): out-depth i -> image w (grid channel 0). ---------------
    i_idx = lax.broadcasted_iota(jnp.int32, (D, W), 0).astype(f32)
    w_idx = lax.broadcasted_iota(jnp.int32, (D, W), 1).astype(f32)
    coord_x = ((lin(i_idx, D) + off_x + 1.0) * W - 1.0) * 0.5
    wx = jnp.maximum(0.0, 1.0 - jnp.abs(coord_x - w_idx))            # (D, W)

    # ---- Fused G^T (D*H, H*W): G^T[(d,h),(j,k)] = Wy[j,h] * Wz[k,d]. -------
    # Built directly on the 2-D layout (no 4-D reshape -> no relayout).
    row = lax.broadcasted_iota(jnp.int32, (DH, HW), 0).astype(f32)   # (d, h) d-major
    col = lax.broadcasted_iota(jnp.int32, (DH, HW), 1).astype(f32)   # (j, k) j-major
    d = jnp.floor((row + 0.5) * (1.0 / H))
    h = row - d * H
    j = jnp.floor((col + 0.5) * (1.0 / W))
    k = col - j * W
    coord_y = ((lin(j, H) + off_y + 1.0) * H - 1.0) * 0.5            # samples image h
    coord_z = ((lin(k, W) + off_z + 1.0) * D - 1.0) * 0.5            # samples image d
    g_t = (jnp.maximum(0.0, 1.0 - jnp.abs(coord_y - h))
           * jnp.maximum(0.0, 1.0 - jnp.abs(coord_z - d)))           # (D*H, H*W)

    # ---- Two lane-dense MXU matmuls, W axis contracted first. --------------
    # A[i,(d,h)] = sum_w Wx[i,w] * image[d,h,w]
    a = jnp.dot(wx, imgT_ref[0], preferred_element_type=f32, precision=_HIGHEST)
    # out[i,(j,k)] = sum_{d,h} A[i,(d,h)] * G^T[(d,h),(j,k)]
    out = jnp.dot(a, g_t, preferred_element_type=f32, precision=_HIGHEST)
    out_ref[0] = out.astype(out_ref.dtype)


def image_adjustment_forward(image, offset):
    """image: (B, D, H, W) float32, offset: (B, 3) float32 -> (B, D, H, W)."""
    B, D, H, W = image.shape
    f32 = jnp.float32
    image = image.astype(f32)
    offset = offset.astype(f32)

    # Lane-dense transposed volume: rows = w, cols = (d, h) d-major.
    imgT = jnp.transpose(image, (0, 3, 1, 2)).reshape(B, W, D * H)

    out_flat = pl.pallas_call(
        _grid_sample_kernel,
        out_shape=jax.ShapeDtypeStruct((B, D, H * W), f32),
        grid=(B,),
        in_specs=[
            pl.BlockSpec(memory_space=pltpu.MemorySpace.SMEM),       # offsets (B, 3)
            pl.BlockSpec((1, W, D * H), lambda b: (b, 0, 0)),        # image^T
        ],
        out_specs=pl.BlockSpec((1, D, H * W), lambda b: (b, 0, 0)),
        compiler_params=pltpu.CompilerParams(
            dimension_semantics=("parallel",),        # shard batch over v7x's 2 TCs
            vmem_limit_bytes=32 * 1024 * 1024,        # headroom; usage well under 1 MiB
        ),
    )(offset, imgT)

    # Columns are (j, k) j-major -> reshape back to (B, D, H, W).
    return out_flat.reshape(B, D, H, W)


def ref_forward(image, offset):
    """Pure-JAX reference reproducing F.grid_sample(..., align_corners=False,
    mode='bilinear', padding_mode='zeros') exactly as used in the module."""
    B, D, H, W = image.shape
    gz, gy, gx = jnp.meshgrid(jnp.linspace(-1.0, 1.0, D),
                              jnp.linspace(-1.0, 1.0, H),
                              jnp.linspace(-1.0, 1.0, W), indexing='ij')
    grid = jnp.stack([gz, gy, gx], axis=-1)[None]                 # (1, D, H, W, 3)
    grid = grid + offset[:, None, None, None, :]                  # (B, D, H, W, 3)
    x, y, z = grid[..., 0], grid[..., 1], grid[..., 2]            # x->W, y->H, z->D
    ix = ((x + 1.0) * W - 1.0) / 2.0
    iy = ((y + 1.0) * H - 1.0) / 2.0
    iz = ((z + 1.0) * D - 1.0) / 2.0
    x0 = jnp.floor(ix); x1 = x0 + 1.0
    y0 = jnp.floor(iy); y1 = y0 + 1.0
    z0 = jnp.floor(iz); z1 = z0 + 1.0

    def gather(img, zc, yc, xc):
        valid = ((zc >= 0) & (zc <= D - 1) & (yc >= 0) & (yc <= H - 1)
                 & (xc >= 0) & (xc <= W - 1))
        zi = jnp.clip(zc, 0, D - 1).astype(jnp.int32)
        yi = jnp.clip(yc, 0, H - 1).astype(jnp.int32)
        xi = jnp.clip(xc, 0, W - 1).astype(jnp.int32)
        return jnp.where(valid, img[zi, yi, xi], 0.0)

    outs = []
    for b in range(B):
        total = jnp.zeros((D, H, W), image.dtype)
        for zc, wz in ((z0, z1 - iz), (z1, iz - z0)):
            for yc, wy in ((y0, y1 - iy), (y1, iy - y0)):
                for xc, wx in ((x0, x1 - ix), (x1, ix - x0)):
                    w = (wz * wy * wx)[b]
                    total = total + w * gather(image[b], zc[b], yc[b], xc[b])
        outs.append(total)
    return jnp.stack(outs)


if __name__ == "__main__":
    B, D, H, W = 2, 8, 16, 16          # image_size = (B, D, H, W)
    key = jax.random.PRNGKey(0)
    k_img, k_off = jax.random.split(key)
    image = jax.random.normal(k_img, (B, D, H, W), dtype=jnp.float32)
    # The module parameter self.offset is zeros-initialized; use small
    # deterministic non-zero values so the sampling shift is exercised.
    offset = 0.2 * jax.random.normal(k_off, (B, 3), dtype=jnp.float32)

    out = image_adjustment_forward(image, offset)
    out = jax.block_until_ready(out)

    ref = ref_forward(image, offset)
    assert out.shape == (B, D, H, W)
    # f32-level parity (HIGHEST-precision MXU, f32 operands/accumulate).
    if not jnp.allclose(out, ref, atol=1e-4, rtol=1e-4):
        raise AssertionError(
            f"kernel mismatch, max abs err = {float(jnp.max(jnp.abs(out - ref)))}")
    print("KERNEL_OK")
</pallas_src>

<mosaic_0001>
module attributes {stable_mosaic.version = 11 : i64} {
  func.func @_grid_sample_kernel(%arg0: i32, %arg1: memref<2x3xf32, #tpu.memory_space<smem>>, %arg2: memref<1x16x128xf32, #tpu.memory_space<vmem>>, %arg3: memref<1x8x256xf32, #tpu.memory_space<vmem>>) attributes {dimension_semantics = [#tpu.dimension_semantics<parallel>], iteration_bounds = array<i64: 2>, scalar_prefetch = 0 : i64, scratch_operands = 0 : i64, tpu.core_type = #tpu.core_type<tc>, window_params = [{transform_indices = @transform_0, window_bounds = array<i64: 2, 3>}, {transform_indices = @transform_1, window_bounds = array<i64: 1, 16, 128>}, {transform_indices = @transform_2, window_bounds = array<i64: 1, 8, 256>}]} {
    %0 = arith.index_cast %arg0 : i32 to index
    %c0 = arith.constant 0 : index
    %1 = memref.load %arg1[%0, %c0] : memref<2x3xf32, #tpu.memory_space<smem>>
    %2 = arith.index_cast %arg0 : i32 to index
    %c1 = arith.constant 1 : index
    %3 = memref.load %arg1[%2, %c1] : memref<2x3xf32, #tpu.memory_space<smem>>
    %4 = arith.index_cast %arg0 : i32 to index
    %c2 = arith.constant 2 : index
    %5 = memref.load %arg1[%4, %c2] : memref<2x3xf32, #tpu.memory_space<smem>>
    %6 = tpu.iota {dimensions = array<i32: 0>} : vector<8x16xi32>
    %7 = arith.sitofp %6 : vector<8x16xi32> to vector<8x16xf32>
    %8 = tpu.iota {dimensions = array<i32: 1>} : vector<8x16xi32>
    %9 = arith.sitofp %8 : vector<8x16xi32> to vector<8x16xf32>
    %cst = arith.constant 0.285714298 : f32
    %10 = vector.broadcast %cst : f32 to vector<8x16xf32>
    %11 = arith.mulf %7, %10 : vector<8x16xf32>
    %cst_0 = arith.constant -1.000000e+00 : f32
    %12 = vector.broadcast %cst_0 : f32 to vector<8x16xf32>
    %13 = arith.addf %12, %11 : vector<8x16xf32>
    %14 = vector.broadcast %1 : f32 to vector<8x16xf32>
    %15 = arith.addf %13, %14 : vector<8x16xf32>
    %cst_1 = arith.constant 1.000000e+00 : f32
    %16 = vector.broadcast %cst_1 : f32 to vector<8x16xf32>
    %17 = arith.addf %15, %16 : vector<8x16xf32>
    %cst_2 = arith.constant 1.600000e+01 : f32
    %18 = vector.broadcast %cst_2 : f32 to vector<8x16xf32>
    %19 = arith.mulf %17, %18 : vector<8x16xf32>
    %cst_3 = arith.constant 1.000000e+00 : f32
    %20 = vector.broadcast %cst_3 : f32 to vector<8x16xf32>
    %21 = arith.subf %19, %20 : vector<8x16xf32>
    %cst_4 = arith.constant 5.000000e-01 : f32
    %22 = vector.broadcast %cst_4 : f32 to vector<8x16xf32>
    %23 = arith.mulf %21, %22 : vector<8x16xf32>
    %24 = arith.subf %23, %9 : vector<8x16xf32>
    %25 = math.absf %24 : vector<8x16xf32>
    %cst_5 = arith.constant 1.000000e+00 : f32
    %26 = vector.broadcast %cst_5 : f32 to vector<8x16xf32>
    %27 = arith.subf %26, %25 : vector<8x16xf32>
    %cst_6 = arith.constant 0.000000e+00 : f32
    %28 = vector.broadcast %cst_6 : f32 to vector<8x16xf32>
    %29 = arith.maximumf %28, %27 : vector<8x16xf32>
    %30 = tpu.iota {dimensions = array<i32: 0>} : vector<128x256xi32>
    %31 = arith.sitofp %30 : vector<128x256xi32> to vector<128x256xf32>
    %32 = tpu.iota {dimensions = array<i32: 1>} : vector<128x256xi32>
    %33 = arith.sitofp %32 : vector<128x256xi32> to vector<128x256xf32>
    %cst_7 = arith.constant 5.000000e-01 : f32
    %34 = vector.broadcast %cst_7 : f32 to vector<128x256xf32>
    %35 = arith.addf %31, %34 : vector<128x256xf32>
    %cst_8 = arith.constant 6.250000e-02 : f32
    %36 = vector.broadcast %cst_8 : f32 to vector<128x256xf32>
    %37 = arith.mulf %35, %36 : vector<128x256xf32>
    %38 = math.floor %37 : vector<128x256xf32>
    %cst_9 = arith.constant 1.600000e+01 : f32
    %39 = vector.broadcast %cst_9 : f32 to vector<128x256xf32>
    %40 = arith.mulf %38, %39 : vector<128x256xf32>
    %41 = arith.subf %31, %40 : vector<128x256xf32>
    %cst_10 = arith.constant 5.000000e-01 : f32
    %42 = vector.broadcast %cst_10 : f32 to vector<128x256xf32>
    %43 = arith.addf %33, %42 : vector<128x256xf32>
    %cst_11 = arith.constant 6.250000e-02 : f32
    %44 = vector.broadcast %cst_11 : f32 to vector<128x256xf32>
    %45 = arith.mulf %43, %44 : vector<128x256xf32>
    %46 = math.floor %45 : vector<128x256xf32>
    %cst_12 = arith.constant 1.600000e+01 : f32
    %47 = vector.broadcast %cst_12 : f32 to vector<128x256xf32>
    %48 = arith.mulf %46, %47 : vector<128x256xf32>
    %49 = arith.subf %33, %48 : vector<128x256xf32>
    %cst_13 = arith.constant 0.13333334 : f32
    %50 = vector.broadcast %cst_13 : f32 to vector<128x256xf32>
    %51 = arith.mulf %46, %50 : vector<128x256xf32>
    %cst_14 = arith.constant -1.000000e+00 : f32
    %52 = vector.broadcast %cst_14 : f32 to vector<128x256xf32>
    %53 = arith.addf %52, %51 : vector<128x256xf32>
    %54 = vector.broadcast %3 : f32 to vector<128x256xf32>
    %55 = arith.addf %53, %54 : vector<128x256xf32>
    %cst_15 = arith.constant 1.000000e+00 : f32
    %56 = vector.broadcast %cst_15 : f32 to vector<128x256xf32>
    %57 = arith.addf %55, %56 : vector<128x256xf32>
    %cst_16 = arith.constant 1.600000e+01 : f32
    %58 = vector.broadcast %cst_16 : f32 to vector<128x256xf32>
    %59 = arith.mulf %57, %58 : vector<128x256xf32>
    %cst_17 = arith.constant 1.000000e+00 : f32
    %60 = vector.broadcast %cst_17 : f32 to vector<128x256xf32>
    %61 = arith.subf %59, %60 : vector<128x256xf32>
    %cst_18 = arith.constant 5.000000e-01 : f32
    %62 = vector.broadcast %cst_18 : f32 to vector<128x256xf32>
    %63 = arith.mulf %61, %62 : vector<128x256xf32>
    %cst_19 = arith.constant 0.13333334 : f32
    %64 = vector.broadcast %cst_19 : f32 to vector<128x256xf32>
    %65 = arith.mulf %49, %64 : vector<128x256xf32>
    %cst_20 = arith.constant -1.000000e+00 : f32
    %66 = vector.broadcast %cst_20 : f32 to vector<128x256xf32>
    %67 = arith.addf %66, %65 : vector<128x256xf32>
    %68 = vector.broadcast %5 : f32 to vector<128x256xf32>
    %69 = arith.addf %67, %68 : vector<128x256xf32>
    %cst_21 = arith.constant 1.000000e+00 : f32
    %70 = vector.broadcast %cst_21 : f32 to vector<128x256xf32>
    %71 = arith.addf %69, %70 : vector<128x256xf32>
    %cst_22 = arith.constant 8.000000e+00 : f32
    %72 = vector.broadcast %cst_22 : f32 to vector<128x256xf32>
    %73 = arith.mulf %71, %72 : vector<128x256xf32>
    %cst_23 = arith.constant 1.000000e+00 : f32
    %74 = vector.broadcast %cst_23 : f32 to vector<128x256xf32>
    %75 = arith.subf %73, %74 : vector<128x256xf32>
    %cst_24 = arith.constant 5.000000e-01 : f32
    %76 = vector.broadcast %cst_24 : f32 to vector<128x256xf32>
    %77 = arith.mulf %75, %76 : vector<128x256xf32>
    %78 = arith.subf %63, %41 : vector<128x256xf32>
    %79 = math.absf %78 : vector<128x256xf32>
    %cst_25 = arith.constant 1.000000e+00 : f32
    %80 = vector.broadcast %cst_25 : f32 to vector<128x256xf32>
    %81 = arith.subf %80, %79 : vector<128x256xf32>
    %cst_26 = arith.constant 0.000000e+00 : f32
    %82 = vector.broadcast %cst_26 : f32 to vector<128x256xf32>
    %83 = arith.maximumf %82, %81 : vector<128x256xf32>
    %84 = arith.subf %77, %38 : vector<128x256xf32>
    %85 = math.absf %84 : vector<128x256xf32>
    %cst_27 = arith.constant 1.000000e+00 : f32
    %86 = vector.broadcast %cst_27 : f32 to vector<128x256xf32>
    %87 = arith.subf %86, %85 : vector<128x256xf32>
    %cst_28 = arith.constant 0.000000e+00 : f32
    %88 = vector.broadcast %cst_28 : f32 to vector<128x256xf32>
    %89 = arith.maximumf %88, %87 : vector<128x256xf32>
    %90 = arith.mulf %83, %89 : vector<128x256xf32>
    %c0_29 = arith.constant 0 : index
    %c0_30 = arith.constant 0 : index
    %c0_31 = arith.constant 0 : index
    %91 = vector.load %arg2[%c0_29, %c0_30, %c0_31] : memref<1x16x128xf32, #tpu.memory_space<vmem>>, vector<1x16x128xf32>
    %92 = vector.shape_cast %91 : vector<1x16x128xf32> to vector<16x128xf32>
    %cst_32 = arith.constant dense<0.000000e+00> : vector<8x128xf32>
    %93 = tpu.matmul %29, %92, %cst_32 {dimension_numbers = #tpu.dot_dimension_numbers<[1], [0], [0], [1], [0, 0, 1, 1], [], []>, precision = #tpu.contract_precision<fp32>} : vector<8x16xf32>, vector<16x128xf32>, vector<8x128xf32> -> vector<8x128xf32>
    %cst_33 = arith.constant dense<0.000000e+00> : vector<8x256xf32>
    %94 = tpu.matmul %93, %90, %cst_33 {dimension_numbers = #tpu.dot_dimension_numbers<[1], [0], [0], [1], [0, 0, 1, 1], [], []>, precision = #tpu.contract_precision<fp32>} : vector<8x128xf32>, vector<128x256xf32>, vector<8x256xf32> -> vector<8x256xf32>
    %c0_34 = arith.constant 0 : index
    %c0_35 = arith.constant 0 : index
    %c0_36 = arith.constant 0 : index
    %95 = vector.load %arg3[%c0_34, %c0_35, %c0_36] : memref<1x8x256xf32, #tpu.memory_space<vmem>>, vector<1x8x256xf32>
    %96 = vector.shape_cast %95 : vector<1x8x256xf32> to vector<8x256xf32>
    %97 = vector.shape_cast %94 : vector<8x256xf32> to vector<1x8x256xf32>
    tpu.vector_store %arg3[%c0_34, %c0_35, %c0_36], %97 {strides = array<i32>} : memref<1x8x256xf32, #tpu.memory_space<vmem>>, vector<1x8x256xf32>,
    return
  }
  func.func @transform_0(%arg0: i32) -> (i32, i32) {
    %c0_i32 = arith.constant 0 : i32
    %c0_i32_0 = arith.constant 0 : i32
    %c0_i32_1 = arith.constant 0 : i32
    return %c0_i32, %c0_i32_0 : i32, i32
  }
  func.func @transform_1(%arg0: i32) -> (i32, i32, i32) {
    %c0_i32 = arith.constant 0 : i32
    %c0_i32_0 = arith.constant 0 : i32
    %c0_i32_1 = arith.constant 0 : i32
    return %arg0, %c0_i32, %c0_i32_0 : i32, i32, i32
  }
  func.func @transform_2(%arg0: i32) -> (i32, i32, i32) {
    %c0_i32 = arith.constant 0 : i32
    %c0_i32_0 = arith.constant 0 : i32
    %c0_i32_1 = arith.constant 0 : i32
    return %arg0, %c0_i32, %c0_i32_0 : i32, i32, i32
  }
}

</mosaic_0001>

<bundles_post_ra>
// kernel: tpu_custom_call.1
= control target key start
LH: loop header
LB: loop body
LE: loop exit
PB: predicated region body
PF: predicated region fallthrough
CT: control target
= control target key end

     0   :  { %7 = vsyncpa [#allocation5], 0  ;;  %s2744_s0 = inlined_call_operand.hbm [shape: f32[2,3], index: 0, kind: input, shape index: {}]   ;;  %s2745_s1 = inlined_call_operand.hbm [shape: f32[2,16,128], index: 1, kind: input, shape index: {}]   ;;  %s2746_s2 = inlined_call_operand.hbm [shape: f32[2,8,256], index: 2, kind: output, shape index: {}]  }
   0x1   :  { %8 = vsyncpa [#allocation3], 0 }
   0x2   :  { %10 = vsyncpa [#allocation3 + $0x1], 0 }
   0x3   :  { %11 = vsyncpa [#allocation4], 0 }
   0x4   :  { %13 = vsyncpa [#allocation4 + $0x1], 0  ;;  %s1808_s9 = smov 0   ;;  %s1810_s10 = smov 0  }
   0x5   :  { %s1812_s11 = smov 0   ;;  %s1814_s12 = smov 0  }
   0x6 LB: > { %s1829_s13 = sadd.s32 4294967295, %s1788_s12   ;;  %s1590_s14 = sadd.s32 4294967294, %s1788_s12   ;;  %s1788_s12 = sphi %s1814_s12, %s2843_s12   ;;  %s1784_s11 = sphi %s1812_s11, %s2842_s11   ;;  %s1780_s10 = sphi %s1810_s10, %s2841_s10   ;;  %s1776_s9 = sphi %s1808_s9, %s2840_s9  }
   0x7   : > { %s1833_s15 = sadd.s32 1, %s1788_s12   ;;  %s47_s16 = sadd.s32 1, %s1784_s11 }
   0x8   : > { %s44_s17 = ssub.s32 %s1788_s12, %s1833_s15  ;;  %p54_p0 = scmp.ne.s32.totalorder %s1784_s11, %s1780_s10 }
   0x9   : > { %p45_p1 = scmp.eq.s32.totalorder %s44_s17, 0  ;;  %p55_p2 = scmp.eq.s32.totalorder %s1788_s12, 0 }
   0xa   : > { %p60_p3 = scmp.ne.s32.totalorder %s1780_s10, %s1776_s9  ;;  %p61_p4 = scmp.eq.s32.totalorder %s1829_s13, 0 }
   0xb   : > { %s1845_s18 = scalar_select %p45_p1, %s1784_s11, %s47_s16  }
   0xc   : > { %p1847_p5 = por %p55_p2, %p54_p0  ;;  %p1853_p6 = por %p61_p4, %p60_p3 }
   0xd   : > { %p84_p7 = scmp.eq.s32.totalorder %s1829_s13, 1  ;;  %p90_p8 = scmp.eq.s32.totalorder %s1590_s14, 1 }
   0xe   : > { %p1591_p9 = scmp.ge.s32.totalorder %s1788_s12, 1  ;;  %p97_p10 = scmp.lt.s32.totalorder %s1788_s12, 3 }
   0xf   : > { %p1860_p11 = por %p84_p7, %p54_p0  ;;  %p1864_p12 = por %p90_p8, %p60_p3 }
  0x10   : > { %p1868_p13 = pnand %p1591_p9, %p97_p10  ;;  %s109_s26 = sshll.u32 %s2744_s0, 4  ;;  %s110_s26 = int_to_ptr.hbm [resolvable:$true] %s109_s26 }
  0x11   : > { %p1635_p2 = scmp.lt.s32.totalorder %s1788_s12, 2  ;;  %s120_s27 = sand.u32 1, %s1784_s11  }
  0x12   : > { %p1622_p1 = pneg %p1868_p13  ;;  %s1594_s29 = sshll.u32 %s120_s27, 4 }
  0x13   : > { %p1884_p3 = pnand %p1635_p2, %p1847_p5  ;;  %s1790_s30 = smov [#allocation2]  }
  0x14   : > { %p1623_p7 = pnand %p1622_p1, %p61_p4  ;;  %s1612_s3 = sshll.u32 %s1788_s12, 4 }
  0x15   : > { %s124_s4 = scalar_lea.vmem [#allocation6], %s1594_s29  ;;  %s129_s8 = scalar_lea.hbm %s2745_s1, %s1612_s3 }
  0x16   : > { %1625 = dma.hbm_to_smem (!%p1623_p7), %s110_s26, 32, %s1790_s30, [#allocation5]  }
  0x17   : > { %s132_s5 = sshll.u32 %s124_s4, 4  ;;  %s130_s14 = sshll.u32 %s129_s8, 4  ;;  %s133_s5 = int_to_ptr.vmem [resolvable:$true] %s132_s5  ;;  %s131_s14 = int_to_ptr.hbm [resolvable:$true] %s130_s14 }
  0x18   : > { %s121_s16 = scalar_lea.sflag [#allocation3], %s120_s27  ;;  %s1688_s17 = sshra.s32 %s131_s14, 4  ;;  %s1689_s17 = int_to_ptr.hbm [resolvable:$true] %s1688_s17 }
  0x19   : > { %s1690_s19 = scalar_lea.hbm %s1689_s17, 16  ;;  %p1692_p8 = pneg %p1884_p3 }
  0x1a   : > { %p1691_p5 = scmp.ne.s32.totalorder %s1689_s17, %s1690_s19  ;;  %s1695_s26 = scalar_lea.hbm %s2745_s1, 32 }
  0x1b   : > { %p1696_p1 = scmp.lt.s32.totalorder %s1689_s17, %s2745_s1  ;;  %p1697_p2 = scmp.lt.s32.totalorder %s1695_s26, %s1690_s19 }
  0x1c   : > { %p1693_p9 = pnand %p1692_p8, %p1691_p5 }
  0x1d   : > { %p1698_p7 = por %p1697_p2, %p1696_p1 }
  0x1e   : > { %p1694_p10 = pneg %p1693_p9 }
  0x20   : > { %p1699_p0 = pnand %p1698_p7, %p1694_p10 }
  0x22   : > { %1702 = shalt.err (!%p1699_p0)
}
  0x23   : > { %s1791_s27 = smov 128   ;;  %s1792_s3 = smov 8  }
  0x24   : > { %1629 = dma.hbm_to_vmem [thread:$0]  (!%p1884_p3), %s131_s14, 256, %s133_s5, %s121_s16, %s1791_s27, %s1791_s27, %s1792_s3  }
  0x25   : > { %144 = sbr.rel (%p1868_p13) target bundleno = 413 (0x19d), region = 28 }
  0x2a   : > { %1763 = dma.done.wait (%p61_p4), [#allocation5], 32  }
  0x2b   : > { %1765 = vsyncadd (%p61_p4), [#allocation5], 4294967264  ;;  %s1909_s4 = sand.u32 1, %s1780_s10  }
  0x2c   : > { %s1599_s6 = sshll.u32 %s1909_s4, 4  ;;  %s152_s7 = scalar_lea.sflag [#allocation3], %s1909_s4 }
  0x2d   : > { %s155_s28 = scalar_lea.vmem [#allocation6], %s1599_s6 }
  0x2e   : > { %1767 = dma.done.wait (%p1853_p6), %s152_s7, 256  }
  0x2f   : > { %1769 = vsyncadd (%p1853_p6), %s152_s7, 4294967040 }
  0x30   : > { %161 = sfence }
  0x31   : > { %v643_v0 = vld [vmem:[%s155_s28 + $0x8] sm:$0xff]  ;;  %v642_v1 = vld [vmem:[%s155_s28] sm:$0xff]  ;;  %s1920_s23 = sshll.u32 %s1829_s13, 7  ;;  %v184_v2 = vlaneseq  ;;  %vm644_vm0 = vcmask 130048   ;;  %s177_s17 = scalar_lea.vmem [#allocation7], %s1599_s6 }
  0x32   : > { %v662_v3 = vand.u32 4294901760, %v643_v0  ;;  %v664_v4 = vand.u32 4294901760, %v642_v1  ;;  %s1923_s5 = sld [smem:[#allocation2 + %s1920_s23]]  ;;  %s180_s8 = sadd.s32 1, %s1920_s23 }
  0x33   : > { %v1926_v5 = vshrl.u32 %v184_v2, 7  ;;  %v188_v6 = vand.u32 127, %v184_v2  ;;  %s1933_s20 = sld [smem:[#allocation2 + %s180_s8]]  ;;  %s182_s14 = sadd.s32 2, %s1920_s23 }
  0x34   : > { %v690_v7 = vsub.f32 %v643_v0, %v662_v3  ;;  %v696_v8 = vsub.f32 %v642_v1, %v664_v4  ;;  %747 = vmatpush.msra.mxu3 %v662_v3  ;;  %663 = vmatpush.msra.mxu0 %v662_v3  ;;  %s1939_s16 = sld [smem:[#allocation2 + %s182_s14]]  ;;  %s1613_s19 = sshll.u32 %s1829_s13, 4 }
  0x35   : > { %v1929_v9 = vcvt.s32.f32 %v1926_v5  ;;  %v1931_v10 = vcvt.s32.f32 %v188_v6  ;;  %v232_v11 = vadd.s32 128, %v188_v6  ;;  %v216_v38 = vadd.s32 120, %v1926_v5  ;;  %s1503_s26 = scalar_lea.hbm %s2746_s2, %s1613_s19  ;;  %s1505_s29 = sshll.u32 %s177_s17, 4  ;;  %s1506_s29 = int_to_ptr.vmem [resolvable:$true] %s1505_s29 }
  0x36   : > { %722 = vmatpush.msra.mxu2 %v690_v7  ;;  %v691_v12 = vand.u32 4294901760, %v690_v7  ;;  %749 = vmatpush.msra.mxu3 %v664_v4  ;;  %v697_v13 = vand.u32 4294901760, %v696_v8  ;;  %v215_v52 = vadd.s32 112, %v1926_v5  ;;  %v214_v59 = vadd.s32 104, %v1926_v5  ;;  %s1507_s30 = sshll.u32 %s1503_s26, 4  ;;  %s1492_s13 = scalar_lea.sflag [#allocation4], %s1909_s4  ;;  %s1508_s30 = int_to_ptr.hbm [resolvable:$true] %s1507_s30 }
  0x37   : > { %v190_v14 = vmul.f32 0.2857143, %v1929_v9  ;;  %v233_v15 = vcvt.s32.f32 %v232_v11  ;;  %v314_v16 = vadd.f32 0.5, %v1931_v10  ;;  %665 = vmatpush.msra.mxu0 %v664_v4  ;;  %v231_v45 = vcvt.s32.f32 %v216_v38  ;;  %s1732_s27 = sshra.s32 %s1508_s30, 4  ;;  %s1738_s28 = scalar_lea.hbm %s2746_s2, 32  ;;  %s1733_s27 = int_to_ptr.hbm [resolvable:$true] %s1732_s27 }
  0x38   : > { %725 = vmatpush.msra.mxu2 %v696_v8  ;;  %v192_v17 = vstv %s1923_s5  ;;  %v692_v18 = vsub.f32 %v690_v7, %v691_v12  ;;  %v698_v19 = vsub.f32 %v696_v8, %v697_v13  ;;  %v230_v58 = vcvt.s32.f32 %v215_v52  ;;  %s1734_s3 = scalar_lea.hbm %s1733_s27, 16  ;;  %p1739_p0 = scmp.lt.s32.totalorder %s1733_s27, %s2746_s2 }
  0x39   : > { %774 = vmatpush.msrb.mxu0 %v691_v12  ;;  %v191_v20 = vadd.f32 -1.0, %v190_v14  ;;  %v315_v21 = vadd.f32 0.5, %v233_v15  ;;  %v316_v22 = vmul.f32 0.0625, %v314_v16  ;;  %v328_v32 = vstv %s1933_s20  ;;  %p1735_p4 = scmp.ne.s32.totalorder %s1733_s27, %s1734_s3  ;;  %p1740_p3 = scmp.lt.s32.totalorder %s1738_s28, %s1734_s3 }
  0x3a   : > { %v693_v23 = vand.u32 4294901760, %v692_v18  ;;  %v699_v24 = vand.u32 4294901760, %v698_v19  ;;  %v343_v44 = vstv %s1939_s16  ;;  %v249_v51 = vadd.f32 0.5, %v231_v45 }
  0x3b   : > { %778 = vmatpush.msrb.mxu0 %v697_v13  ;;  %v193_v25 = vadd.f32 %v192_v17, %v191_v20  ;;  %v317_v26 = vmul.f32 0.0625, %v315_v21  ;;  %v318_v27 = vfloor.f32 %v316_v22  ;;  %v248_v2 = vadd.f32 0.5, %v230_v58  ;;  %p1736_p6 = pnand %p1735_p4, %p1860_p11  ;;  %p1741_p5 = por %p1740_p3, %p1739_p0 }
  0x3c   : > { %694 = vmatpush.msra.mxu1 %v693_v23  ;;  %v265_v57 = vmul.f32 0.0625, %v249_v51  ;;  %v213_v18 = vadd.s32 96, %v1926_v5 }
  0x3d   : > { %v194_v28 = vadd.f32 1.0, %v193_v25  ;;  %v319_v29 = vfloor.f32 %v317_v26  ;;  %v320_v30 = vmul.f32 16.0, %v318_v27  ;;  %v324_v31 = vmul.f32 0.13333334, %v318_v27  ;;  %p1737_p13 = pneg %p1736_p6 }
  0x3e   : > { %700 = vmatpush.msra.mxu1 %v699_v24  ;;  %v1950_v1 = vfloor.f32 %v265_v57 }
  0x3f   : > { %v195_v33 = vmul.f32 16.0, %v194_v28  ;;  %v321_v34 = vmul.f32 16.0, %v319_v29  ;;  %v322_v35 = vsub.f32 %v1931_v10, %v320_v30  ;;  %v325_v36 = vmul.f32 0.13333334, %v319_v29  ;;  %p1742_p8 = pnand %p1741_p5, %p1737_p13 }
  0x40   : > { %799 = vmatpush.msrb.mxu1 %v662_v3  ;;  %v326_v37 = vadd.f32 -1.0, %v324_v31  ;;  %v229_v3 = vcvt.s32.f32 %v214_v59  ;;  %v297_v8 = vmul.f32 16.0, %v1950_v1  ;;  %v228_v28 = vcvt.s32.f32 %v213_v18 }
  0x41   : > { %v1602_v39 = vadd.f32 -1.0, %v195_v33  ;;  %v323_v40 = vsub.f32 %v233_v15, %v321_v34  ;;  %v327_v41 = vadd.f32 -1.0, %v325_v36  ;;  %v339_v42 = vmul.f32 0.13333334, %v322_v35 }
  0x42   : > { %801 = vmatpush.msrb.mxu1 %v664_v4  ;;  %v329_v43 = vadd.f32 %v328_v32, %v326_v37  ;;  %v247_v11 = vadd.f32 0.5, %v229_v3  ;;  %v1955_v15 = vsub.f32 %v231_v45, %v297_v8  ;;  %v246_v36 = vadd.f32 0.5, %v228_v28 }
  0x43   : > { %v197_v46 = vmul.f32 0.5, %v1602_v39  ;;  %v330_v47 = vadd.f32 %v328_v32, %v327_v41  ;;  %v340_v48 = vmul.f32 0.13333334, %v323_v40  ;;  %v341_v49 = vadd.f32 -1.0, %v339_v42 }
  0x44   : > { %v331_v50 = vadd.f32 1.0, %v329_v43  ;;  %v263_v17 = vmul.f32 0.0625, %v247_v11 }
  0x45   : > { %v198_v53 = vsub.f32 %v197_v46, %v1931_v10  ;;  %v342_v54 = vadd.f32 -1.0, %v340_v48  ;;  %v344_v55 = vadd.f32 %v343_v44, %v341_v49  ;;  %v332_v61 = vadd.f32 1.0, %v330_v47 }
  0x46   : > { %v333_v56 = vmul.f32 16.0, %v331_v50  ;;  %v264_v10 = vmul.f32 0.0625, %v248_v2  ;;  %v1967_v24 = vfloor.f32 %v263_v17  ;;  %v211_v2 = vadd.s32 80, %v1926_v5 }
  0x47   : > { %v199_v60 = vand.u32 2147483647, %v198_v53  ;;  %v1948_v62 = vadd.f32 %v343_v44, %v342_v54  ;;  %v346_v63 = vadd.f32 1.0, %v344_v55  ;;  %v334_v13 = vmul.f32 16.0, %v332_v61 }
  0x48   : > { %v1603_v0 = vadd.f32 -1.0, %v333_v56  ;;  %v1957_v16 = vfloor.f32 %v264_v10  ;;  %v295_v32 = vmul.f32 16.0, %v1967_v24  ;;  %v262_v44 = vmul.f32 0.0625, %v246_v36 }
  0x49   : > { %v200_v4 = vsub.f32 1.0, %v199_v60  ;;  %v348_v6 = vmul.f32 8.0, %v346_v63  ;;  %v1969_v25 = vadd.f32 -1.0, %v334_v13  ;;  %v212_v56 = vadd.s32 88, %v1926_v5 }
  0x4a   : > { %v1952_v7 = vmul.f32 0.5, %v1603_v0  ;;  %v296_v23 = vmul.f32 16.0, %v1957_v16  ;;  %v1984_v40 = vsub.f32 %v229_v3, %v295_v32  ;;  %v1988_v52 = vfloor.f32 %v262_v44 }
  0x4b   : > { %v201_v12 = vmax.f32 %v200_v4, 0.0  ;;  %v1605_v14 = vadd.f32 -1.0, %v348_v6  ;;  %v227_v0 = vcvt.s32.f32 %v212_v56  ;;  %v1997_v3 = vadd.f32 1.0, %v1948_v62 }
  0x4c   : > { %v384_v22 = vsub.f32 %v1952_v7, %v1955_v15  ;;  %v1977_v31 = vsub.f32 %v230_v58, %v296_v23  ;;  %v380_v48 = vsub.f32 %v1952_v7, %v1984_v40  ;;  %v294_v59 = vmul.f32 16.0, %v1988_v52 }
  0x4d   : > { %v1960_v19 = vmul.f32 0.5, %v1605_v14  ;;  %v646_v20 = vsel %vm644_vm0, %v201_v12, 0  ;;  %v245_v12 = vadd.f32 0.5, %v227_v0  ;;  %v226_v13 = vcvt.s32.f32 %v211_v2 }
  0x4e   : > { %v1962_v21 = vand.u32 4294901760, %v646_v20  ;;  %v416_v30 = vand.u32 2147483647, %v384_v22  ;;  %v382_v39 = vsub.f32 %v1952_v7, %v1977_v31  ;;  %v412_v55 = vand.u32 2147483647, %v380_v48 }
  0x4f   : > { %v512_v26 = vsub.f32 %v1960_v19, %v1950_v1  ;;  %v510_v27 = vsub.f32 %v1960_v19, %v1957_v16  ;;  %v508_v35 = vsub.f32 %v1960_v19, %v1967_v24  ;;  %v506_v60 = vsub.f32 %v1960_v19, %v1988_v52 }
  0x50   : > { %v667_v29 = vsub.f32 %v646_v20, %v1962_v21  ;;  %702 = vmatmul.f32.vlgmr.msra.gmra.mxu1 %v1962_v21  ;;  %v448_v38 = vsub.f32 1.0, %v416_v30  ;;  %v414_v47 = vand.u32 2147483647, %v382_v39  ;;  %v444_v63 = vsub.f32 1.0, %v412_v55 }
  0x51   : > { %v544_v33 = vand.u32 2147483647, %v512_v26  ;;  %v542_v34 = vand.u32 2147483647, %v510_v27  ;;  %v540_v43 = vand.u32 2147483647, %v508_v35  ;;  %v2001_v6 = vsub.f32 %v228_v28, %v294_v59 }
  0x52   : > { %728 = vmatmul.f32.vlgmr.msra.gmra.mxu2 %v667_v29  ;;  %v668_v37 = vand.u32 4294901760, %v667_v29  ;;  %v480_v46 = vmax.f32 %v448_v38, 0.0  ;;  %v446_v54 = vsub.f32 1.0, %v414_v47  ;;  %v538_v8 = vand.u32 2147483647, %v506_v60 }
  0x53   : > { %v576_v41 = vsub.f32 1.0, %v544_v33  ;;  %v574_v42 = vsub.f32 1.0, %v542_v34  ;;  %v572_v51 = vsub.f32 1.0, %v540_v43  ;;  %v476_v11 = vmax.f32 %v444_v63, 0.0 }
  0x54   : > { %753 = vmatmul.f32.vlgmr.msra.gmra.mxu3 %v668_v37  ;;  %v669_v45 = vsub.f32 %v667_v29, %v668_v37  ;;  %v478_v61 = vmax.f32 %v446_v54, 0.0  ;;  %v378_v17 = vsub.f32 %v1952_v7, %v2001_v6  ;;  %v570_v18 = vsub.f32 1.0, %v538_v8 }
  0x55   : > { %v608_v49 = vmax.f32 %v576_v41, 0.0  ;;  %v606_v50 = vmax.f32 %v574_v42, 0.0  ;;  %v604_v58 = vmax.f32 %v572_v51, 0.0  ;;  %v210_v62 = vadd.s32 72, %v1926_v5 }
  0x56   : > { %v670_v53 = vand.u32 4294901760, %v669_v45  ;;  %v261_v23 = vmul.f32 0.0625, %v245_v12  ;;  %v244_v26 = vadd.f32 0.5, %v226_v13  ;;  %v410_v28 = vand.u32 2147483647, %v378_v17 }
  0x57   : > { %v640_v57 = vmul.f32 %v608_v49, %v480_v46  ;;  %v638_v10 = vmul.f32 %v606_v50, %v478_v61  ;;  %v636_v22 = vmul.f32 %v604_v58, %v476_v11  ;;  %v602_v29 = vmax.f32 %v570_v18, 0.0 }
  0x58   : > { %671 = vmatmul.f32.vlgmr.msra.gmra.mxu0 %v670_v53  ;;  %803 = vmatmul.f32.vlgmr.msrb.gmra.mxu1 %v1962_v21  ;;  %v225_v30 = vcvt.s32.f32 %v210_v62  ;;  %v2021_v34 = vfloor.f32 %v261_v23  ;;  %v260_v35 = vmul.f32 0.0625, %v244_v26  ;;  %v442_v37 = vsub.f32 1.0, %v410_v28 }
  0x59   : > { %v1999_v4 = vand.u32 4294901760, %v640_v57  ;;  %v2011_v20 = vand.u32 4294901760, %v638_v10  ;;  %v2018_v33 = vand.u32 4294901760, %v636_v22  ;;  %v2028_v39 = vadd.s32 64, %v1926_v5 }
  0x5a   : > { %v243_v38 = vadd.f32 0.5, %v225_v30  ;;  %v293_v43 = vmul.f32 16.0, %v2021_v34  ;;  %v504_v44 = vsub.f32 %v1960_v19, %v2021_v34  ;;  %v474_v46 = vmax.f32 %v442_v37, 0.0 }
  0x5b   : > { %v2004_v14 = vsub.f32 %v640_v57, %v1999_v4  ;;  %1004 = vmatpush.msra.mxu1 %v1999_v4  ;;  %808 = vmatpush.msrb.mxu2 %v1999_v4  ;;  %v2016_v32 = vsub.f32 %v638_v10, %v2011_v20  ;;  %v2033_v42 = vsub.f32 %v636_v22, %v2018_v33  ;;  %v2040_v47 = vfloor.f32 %v260_v35 }
  0x5c   : > { %v2047_v50 = vsub.f32 %v227_v0, %v293_v43  ;;  %v536_v51 = vand.u32 2147483647, %v504_v44  ;;  %v634_v53 = vmul.f32 %v602_v29, %v474_v46  ;;  %v224_v26 = vcvt.s32.f32 %v2028_v39 }
  0x5d   : > { %v2752_v27 = vand.u32 4294901760, %v2004_v14  ;;  %951 = vmatpush.msra.mxu0 %v2004_v14  ;;  %1006 = vmatpush.msra.mxu1 %v2011_v20  ;;  %v2751_v41 = vand.u32 4294901760, %v2016_v32  ;;  %v2750_v49 = vand.u32 4294901760, %v2033_v42  ;;  %v292_v54 = vmul.f32 16.0, %v2040_v47 }
  0x5e   : > { %810 = vmatpush.msrb.mxu2 %v2011_v20  ;;  %v502_v55 = vsub.f32 %v1960_v19, %v2040_v47  ;;  %v376_v59 = vsub.f32 %v1952_v7, %v2047_v50  ;;  %v568_v60 = vsub.f32 1.0, %v536_v51  ;;  %v2060_v61 = vand.u32 4294901760, %v634_v53 }
  0x5f   : > { %v851_v36 = vsub.f32 %v2004_v14, %v2752_v27  ;;  %1008 = vmatpush.msra.mxu1 %v2018_v33  ;;  %954 = vmatpush.msra.mxu0 %v2016_v32  ;;  %v857_v48 = vsub.f32 %v2016_v32, %v2751_v41  ;;  %v863_v58 = vsub.f32 %v2033_v42, %v2750_v49  ;;  %v208_v28 = vadd.s32 56, %v1926_v5 }
  0x60   : > { %780 = vmatmul.f32.vlgmr.msrb.gmra.mxu0 %v1962_v21  ;;  %812 = vmatpush.msrb.mxu2 %v2018_v33  ;;  %v259_v21 = vmul.f32 0.0625, %v243_v38  ;;  %v2062_v63 = vsub.f32 %v226_v13, %v292_v54  ;;  %v534_v0 = vand.u32 2147483647, %v502_v55  ;;  %v408_v10 = vand.u32 2147483647, %v376_v59 }
  0x61   : > { %v852_v45 = vand.u32 4294901760, %v851_v36  ;;  %957 = vmatpush.msra.mxu0 %v2033_v42  ;;  %v858_v57 = vand.u32 4294901760, %v857_v48  ;;  %v864_v8 = vand.u32 4294901760, %v863_v58  ;;  %v600_v11 = vmax.f32 %v568_v60, 0.0  ;;  %1010 = vmatpush.msra.mxu1 %v2060_v61 }
  0x62   : > { %v2053_v56 = vfloor.f32 %v259_v21  ;;  %v2068_v17 = vsub.f32 %v634_v53, %v2060_v61  ;;  %v374_v18 = vsub.f32 %v1952_v7, %v2062_v63  ;;  %v566_v62 = vsub.f32 1.0, %v534_v0  ;;  %814 = vmatpush.msrb.mxu2 %v2060_v61 }
  0x63   : > { %853 = vmatpush.msrb.mxu3 %v852_v45  ;;  %v440_v22 = vsub.f32 1.0, %v408_v10  ;;  %v242_v43 = vadd.f32 0.5, %v224_v26  ;;  %v223_v44 = vcvt.s32.f32 %v208_v28  ;;  %v207_v21 = vadd.s32 48, %v1926_v5 }
  0x64   : > { %v291_v2 = vmul.f32 16.0, %v2053_v56  ;;  %v500_v12 = vsub.f32 %v1960_v19, %v2053_v56  ;;  %v2749_v29 = vand.u32 4294901760, %v2068_v17  ;;  %960 = vmatpush.msra.mxu0 %v2068_v17  ;;  %v406_v35 = vand.u32 2147483647, %v374_v18 }
  0x65   : > { %859 = vmatpush.msrb.mxu3 %v858_v57  ;;  %v598_v36 = vmax.f32 %v566_v62, 0.0  ;;  %v258_v53 = vmul.f32 0.0625, %v242_v43  ;;  %v241_v54 = vadd.f32 0.5, %v223_v44  ;;  %v222_v59 = vcvt.s32.f32 %v207_v21 }
  0x66   : > { %v2073_v13 = vsub.f32 %v225_v30, %v291_v2  ;;  %v532_v23 = vand.u32 2147483647, %v500_v12  ;;  %v472_v30 = vmax.f32 %v440_v22, 0.0  ;;  %v869_v45 = vsub.f32 %v2068_v17, %v2749_v29 }
  0x67   : > { %865 = vmatpush.msrb.mxu3 %v864_v8  ;;  %v438_v39 = vsub.f32 1.0, %v406_v35  ;;  %v2088_v0 = vfloor.f32 %v258_v53  ;;  %v257_v2 = vmul.f32 0.0625, %v241_v54  ;;  %v2091_v8 = vadd.s32 40, %v1926_v5 }
  0x68   : > { %v372_v37 = vsub.f32 %v1952_v7, %v2073_v13  ;;  %v564_v38 = vsub.f32 1.0, %v532_v23  ;;  %v632_v48 = vmul.f32 %v600_v11, %v472_v30  ;;  %v870_v55 = vand.u32 4294901760, %v869_v45 }
  0x69   : > { %v470_v57 = vmax.f32 %v438_v39, 0.0  ;;  %v2094_v10 = vmul.f32 8.0, %v1997_v3  ;;  %v240_v18 = vadd.f32 0.5, %v222_v59  ;;  %v290_v22 = vmul.f32 16.0, %v2088_v0 }
  0x6a   : > { %v404_v46 = vand.u32 2147483647, %v372_v37  ;;  %v596_v51 = vmax.f32 %v564_v38, 0.0  ;;  %v2086_v60 = vand.u32 4294901760, %v632_v48  ;;  %871 = vmatpush.msrb.mxu3 %v870_v55  ;;  %v498_v23 = vsub.f32 %v1960_v19, %v2088_v0 }
  0x6b   : > { %v630_v11 = vmul.f32 %v598_v36, %v470_v57  ;;  %v2104_v28 = vfloor.f32 %v257_v2  ;;  %v256_v36 = vmul.f32 0.0625, %v240_v18  ;;  %v221_v37 = vcvt.s32.f32 %v2091_v8 }
  0x6c   : > { %v436_v58 = vsub.f32 1.0, %v404_v46  ;;  %v2097_v62 = vsub.f32 %v632_v48, %v2086_v60  ;;  %1012 = vmatpush.msra.mxu1 %v2086_v60  ;;  %816 = vmatpush.msrb.mxu2 %v2086_v60  ;;  %v2111_v38 = vsub.f32 %v224_v26, %v290_v22  ;;  %v530_v43 = vand.u32 2147483647, %v498_v23 }
  0x6d   : > { %v2106_v3 = vand.u32 4294901760, %v630_v11  ;;  %v289_v45 = vmul.f32 16.0, %v2104_v28  ;;  %v496_v21 = vsub.f32 %v1960_v19, %v2104_v28  ;;  %v2123_v48 = vfloor.f32 %v256_v36 }
  0x6e   : > { %v468_v12 = vmax.f32 %v436_v58, 0.0  ;;  %v2748_v30 = vand.u32 4294901760, %v2097_v62  ;;  %963 = vmatpush.msra.mxu0 %v2097_v62  ;;  %v562_v53 = vsub.f32 1.0, %v530_v43 }
  0x6f   : > { %2786 = vst [vmem:[#allocation11_spill] sm:$0xff] %v2106_v3  ;;  %v2115_v39 = vsub.f32 %v630_v11, %v2106_v3  ;;  %1014 = vmatpush.msra.mxu1 %v2106_v3  ;;  %818 = vmatpush.msrb.mxu2 %v2106_v3  ;;  %v2130_v54 = vsub.f32 %v223_v44, %v289_v45  ;;  %v528_v58 = vand.u32 2147483647, %v496_v21  ;;  %v288_v2 = vmul.f32 16.0, %v2123_v48 }
  0x70   : > { %v628_v35 = vmul.f32 %v596_v51, %v468_v12  ;;  %v875_v26 = vsub.f32 %v2097_v62, %v2748_v30  ;;  %v370_v51 = vsub.f32 %v1952_v7, %v2111_v38  ;;  %v594_v18 = vmax.f32 %v562_v53, 0.0 }
  0x71   : > { %v2747_v55 = vand.u32 4294901760, %v2115_v39  ;;  %966 = vmatpush.msra.mxu0 %v2115_v39  ;;  %v368_v22 = vsub.f32 %v1952_v7, %v2130_v54  ;;  %v2147_v36 = vsub.f32 %v222_v59, %v288_v2  ;;  %v494_v21 = vsub.f32 %v1960_v19, %v2123_v48 }
  0x72   : > { %v2117_v46 = vand.u32 4294901760, %v628_v35  ;;  %v876_v11 = vand.u32 4294901760, %v875_v26  ;;  %v402_v12 = vand.u32 2147483647, %v370_v51  ;;  %v239_v26 = vadd.f32 0.5, %v221_v37 }
  0x73   : > { %v881_v44 = vsub.f32 %v2115_v39, %v2747_v55  ;;  %v400_v45 = vand.u32 2147483647, %v368_v22  ;;  %v2159_v22 = vmul.f32 0.5, %v1969_v25 }
  0x74   : > { %2787 = vst [vmem:[#allocation12_spill] sm:$0xff] %v2117_v46  ;;  %v2134_v57 = vsub.f32 %v628_v35, %v2117_v46  ;;  %1016 = vmatpush.msra.mxu1 %v2117_v46  ;;  %820 = vmatpush.msrb.mxu2 %v2117_v46  ;;  %v560_v35 = vsub.f32 1.0, %v528_v58  ;;  %v434_v43 = vsub.f32 1.0, %v402_v12  ;;  %v366_v58 = vsub.f32 %v1952_v7, %v2147_v36 }
  0x75   : > { %877 = vmatpush.msrb.mxu3 %v876_v11  ;;  %v882_v51 = vand.u32 4294901760, %v881_v44  ;;  %v432_v2 = vsub.f32 1.0, %v400_v45  ;;  %v526_v11 = vand.u32 2147483647, %v494_v21  ;;  %v255_v12 = vmul.f32 0.0625, %v239_v26 }
  0x76   : > { %v2753_v23 = vand.u32 4294901760, %v2134_v57  ;;  %969 = vmatpush.msra.mxu0 %v2134_v57  ;;  %v592_v55 = vmax.f32 %v560_v35, 0.0  ;;  %v466_v59 = vmax.f32 %v434_v43, 0.0  ;;  %v398_v29 = vand.u32 2147483647, %v366_v58 }
  0x77   : > { %883 = vmatpush.msrb.mxu3 %v882_v51  ;;  %v205_v44 = vadd.s32 32, %v1926_v5  ;;  %v464_v41 = vmax.f32 %v432_v2, 0.0  ;;  %v558_v27 = vsub.f32 1.0, %v526_v11  ;;  %v2165_v35 = vadd.f32 -1.0, %v2094_v10 }
  0x78   : > { %v887_v53 = vsub.f32 %v2134_v57, %v2753_v23  ;;  %v626_v49 = vmul.f32 %v594_v18, %v466_v59  ;;  %v2162_v23 = vfloor.f32 %v255_v12  ;;  %v430_v43 = vsub.f32 1.0, %v398_v29 }
  0x79   : > { %v220_v45 = vcvt.s32.f32 %v205_v44  ;;  %v204_v21 = vadd.s32 24, %v1926_v5  ;;  %v624_v26 = vmul.f32 %v592_v55, %v464_v41  ;;  %v590_v51 = vmax.f32 %v558_v27, 0.0 }
  0x7a   : > { %v888_v30 = vand.u32 4294901760, %v887_v53  ;;  %2788 = vst [vmem:[#allocation13_spill] sm:$0xff] %v2162_v23  ;;  %v2168_v25 = vand.u32 4294901760, %v626_v49  ;;  %v287_v53 = vmul.f32 16.0, %v2162_v23  ;;  %v462_v58 = vmax.f32 %v430_v43, 0.0 }
  0x7b   : > { %v492_v18 = vsub.f32 %v1960_v19, %v2162_v23  ;;  %v238_v59 = vadd.f32 0.5, %v220_v45  ;;  %v219_v2 = vcvt.s32.f32 %v204_v21  ;;  %v203_v27 = vadd.s32 16, %v1926_v5 }
  0x7c   : > { %889 = vmatpush.msrb.mxu3 %v888_v30  ;;  %2789 = vst [vmem:[#allocation14_spill] sm:$0xff] %v2168_v25  ;;  %v2174_v10 = vsub.f32 %v626_v49, %v2168_v25  ;;  %v2176_v30 = vand.u32 4294901760, %v624_v26  ;;  %1018 = vmatpush.msra.mxu1 %v2168_v25  ;;  %v2181_v29 = vsub.f32 %v221_v37, %v287_v53 }
  0x7d   : > { %822 = vmatpush.msrb.mxu2 %v2168_v25  ;;  %v622_v41 = vmul.f32 %v590_v51, %v462_v58  ;;  %v524_v55 = vand.u32 2147483647, %v492_v18  ;;  %v254_v11 = vmul.f32 0.0625, %v238_v59  ;;  %v237_v12 = vadd.f32 0.5, %v219_v2 }
  0x7e   : > { %2790 = vst [vmem:[#allocation15_spill] sm:$0xff] %v2176_v30  ;;  %v2755_v44 = vand.u32 4294901760, %v2174_v10  ;;  %v2187_v49 = vsub.f32 %v624_v26, %v2176_v30  ;;  %972 = vmatpush.msra.mxu0 %v2174_v10  ;;  %v364_v8 = vsub.f32 %v1952_v7, %v2181_v29  ;;  %1020 = vmatpush.msra.mxu1 %v2176_v30  ;;  %v218_v37 = vcvt.s32.f32 %v203_v27 }
  0x7f   : > { %2791 = vst [vmem:[#allocation16_spill] sm:$0xff] %v2181_v29  ;;  %v2193_v43 = vand.u32 4294901760, %v622_v41  ;;  %v556_v21 = vsub.f32 1.0, %v524_v55  ;;  %v2195_v51 = vfloor.f32 %v254_v11  ;;  %824 = vmatpush.msrb.mxu2 %v2176_v30  ;;  %v253_v53 = vmul.f32 0.0625, %v237_v12 }
  0x80   : > { %2792 = vst [vmem:[#allocation17_spill] sm:$0xff] %v2187_v49  ;;  %v893_v26 = vsub.f32 %v2174_v10, %v2755_v44  ;;  %v2762_v58 = vand.u32 4294901760, %v2187_v49  ;;  %975 = vmatpush.msra.mxu0 %v2187_v49  ;;  %v396_v18 = vand.u32 2147483647, %v364_v8  ;;  %v236_v59 = vadd.f32 0.5, %v218_v37 }
  0x81   : > { %2793 = vst [vmem:[#allocation18_spill] sm:$0xff] %v2193_v43  ;;  %v2204_v27 = vsub.f32 %v622_v41, %v2193_v43  ;;  %v588_v23 = vmax.f32 %v556_v21, 0.0  ;;  %v286_v55 = vmul.f32 16.0, %v2195_v51  ;;  %v490_v11 = vsub.f32 %v1960_v19, %v2195_v51  ;;  %1022 = vmatpush.msra.mxu1 %v2193_v43  ;;  %826 = vmatpush.msrb.mxu2 %v2193_v43 }
  0x82   : > { %2794 = vst [vmem:[#allocation19_spill] sm:$0xff] %v2195_v51  ;;  %v894_v12 = vand.u32 4294901760, %v893_v26  ;;  %v899_v44 = vsub.f32 %v2187_v49, %v2762_v58  ;;  %v428_v8 = vsub.f32 1.0, %v396_v18  ;;  %v2214_v30 = vfloor.f32 %v253_v53 }
  0x83   : > { %v2766_v41 = vand.u32 4294901760, %v2204_v27  ;;  %978 = vmatpush.msra.mxu0 %v2204_v27  ;;  %v2218_v21 = vsub.f32 %v220_v45, %v286_v55  ;;  %v522_v25 = vand.u32 2147483647, %v490_v11  ;;  %v252_v51 = vmul.f32 0.0625, %v236_v59 }
  0x84   : > { %2795 = vst [vmem:[#allocation20_spill] sm:$0xff] %v2214_v30  ;;  %895 = vmatpush.msrb.mxu3 %v894_v12  ;;  %v900_v29 = vand.u32 4294901760, %v899_v44  ;;  %v460_v46 = vmax.f32 %v428_v8, 0.0  ;;  %v285_v26 = vmul.f32 16.0, %v2214_v30  ;;  %v488_v43 = vsub.f32 %v1960_v19, %v2214_v30 }
  0x85   : > { %v905_v53 = vsub.f32 %v2204_v27, %v2766_v41  ;;  %v362_v18 = vsub.f32 %v1952_v7, %v2218_v21  ;;  %v554_v58 = vsub.f32 1.0, %v522_v25  ;;  %v2228_v45 = vfloor.f32 %v252_v51 }
  0x86   : > { %901 = vmatpush.msrb.mxu3 %v900_v29  ;;  %v620_v59 = vmul.f32 %v588_v23, %v460_v46  ;;  %v2230_v55 = vsub.f32 %v219_v2, %v285_v26  ;;  %v520_v44 = vand.u32 2147483647, %v488_v43  ;;  %v202_v11 = vadd.s32 8, %v1926_v5 }
  0x87   : > { %2796 = vst [vmem:[#allocation21_spill] sm:$0xff] %v2228_v45  ;;  %v906_v12 = vand.u32 4294901760, %v905_v53  ;;  %v394_v8 = vand.u32 2147483647, %v362_v18  ;;  %v586_v30 = vmax.f32 %v554_v58, 0.0  ;;  %v284_v3 = vmul.f32 16.0, %v2228_v45 }
  0x88   : > { %2797 = vst [vmem:[#allocation22_spill] sm:$0xff] %v2230_v55  ;;  %v2234_v49 = vand.u32 4294901760, %v620_v59  ;;  %v360_v41 = vsub.f32 %v1952_v7, %v2230_v55  ;;  %v552_v25 = vsub.f32 1.0, %v520_v44  ;;  %v486_v29 = vsub.f32 %v1960_v19, %v2228_v45 }
  0x89   : > { %907 = vmatpush.msrb.mxu3 %v906_v12  ;;  %v426_v46 = vsub.f32 1.0, %v394_v8  ;;  %v2240_v23 = vsub.f32 %v218_v37, %v284_v3  ;;  %v217_v2 = vcvt.s32.f32 %v202_v11  ;;  %v234_v5 = vadd.f32 0.5, %v1929_v9 }
  0x8a   : > { %2798 = vst [vmem:[#allocation23_spill] sm:$0xff] %v2234_v49  ;;  %v2244_v43 = vmul.f32 0.5, %v2165_v35  ;;  %v2247_v51 = vsub.f32 %v620_v59, %v2234_v49  ;;  %v392_v58 = vand.u32 2147483647, %v360_v41  ;;  %1024 = vmatpush.msra.mxu1 %v2234_v49  ;;  %v518_v26 = vand.u32 2147483647, %v486_v29  ;;  %828 = vmatpush.msrb.mxu2 %v2234_v49 }
  0x8b   : > { %2799 = vst [vmem:[#allocation24_spill] sm:$0xff] %v2240_v23  ;;  %v458_v53 = vmax.f32 %v426_v46, 0.0  ;;  %v358_v3 = vsub.f32 %v1952_v7, %v2240_v23  ;;  %v235_v37 = vadd.f32 0.5, %v217_v2  ;;  %v250_v18 = vmul.f32 0.0625, %v234_v5 }
  0x8c   : > { %v2772_v44 = vand.u32 4294901760, %v2247_v51  ;;  %981 = vmatpush.msra.mxu0 %v2247_v51  ;;  %v424_v35 = vsub.f32 1.0, %v392_v58  ;;  %v584_v11 = vmax.f32 %v552_v25, 0.0  ;;  %v550_v59 = vsub.f32 1.0, %v518_v26 }
  0x8d   : > { %v618_v12 = vmul.f32 %v586_v30, %v458_v53  ;;  %v390_v41 = vand.u32 2147483647, %v358_v3  ;;  %v251_v8 = vmul.f32 0.0625, %v235_v37  ;;  %v2255_v45 = vfloor.f32 %v250_v18 }
  0x8e   : > { %v911_v29 = vsub.f32 %v2247_v51, %v2772_v44  ;;  %v456_v46 = vmax.f32 %v424_v35, 0.0  ;;  %v582_v23 = vmax.f32 %v550_v59, 0.0  ;;  %v385_v5 = vsub.f32 %v2159_v22, %v1955_v15 }
  0x8f   : > { %2800 = vst [vmem:[#allocation25_spill] sm:$0xff] %v2255_v45  ;;  %v2262_v49 = vand.u32 4294901760, %v618_v12  ;;  %v422_v55 = vsub.f32 1.0, %v390_v41  ;;  %v2264_v58 = vfloor.f32 %v251_v8  ;;  %v282_v30 = vmul.f32 16.0, %v2255_v45 }
  0x90   : > { %v912_v25 = vand.u32 4294901760, %v911_v29  ;;  %v616_v26 = vmul.f32 %v584_v11, %v456_v46  ;;  %v482_v53 = vsub.f32 %v1960_v19, %v2255_v45  ;;  %v417_v3 = vand.u32 2147483647, %v385_v5 }
  0x91   : > { %2801 = vst [vmem:[#allocation26_spill] sm:$0xff] %v2264_v58  ;;  %v2270_v37 = vsub.f32 %v618_v12, %v2262_v49  ;;  %v454_v18 = vmax.f32 %v422_v55, 0.0  ;;  %1026 = vmatpush.msra.mxu1 %v2262_v49  ;;  %v283_v15 = vmul.f32 16.0, %v2264_v58  ;;  %v484_v35 = vsub.f32 %v1960_v19, %v2264_v58  ;;  %830 = vmatpush.msrb.mxu2 %v2262_v49 }
  0x92   : > { %913 = vmatpush.msrb.mxu3 %v912_v25  ;;  %v2277_v59 = vand.u32 4294901760, %v616_v26  ;;  %v2280_v11 = vsub.f32 %v1929_v9, %v282_v30  ;;  %v514_v41 = vand.u32 2147483647, %v482_v53  ;;  %v449_v8 = vsub.f32 1.0, %v417_v3 }
  0x93   : > { %v2771_v12 = vand.u32 4294901760, %v2270_v37  ;;  %984 = vmatpush.msra.mxu0 %v2270_v37  ;;  %v614_v55 = vmul.f32 %v582_v23, %v454_v18  ;;  %v2284_v29 = vsub.f32 %v217_v2, %v283_v15  ;;  %v516_v46 = vand.u32 2147483647, %v484_v35 }
  0x94   : > { %2802 = vst [vmem:[#allocation27_spill] sm:$0xff] %v2277_v59  ;;  %v2287_v19 = vsub.f32 %v616_v26, %v2277_v59  ;;  %1028 = vmatpush.msra.mxu1 %v2277_v59  ;;  %v354_v5 = vsub.f32 %v1952_v7, %v2280_v11  ;;  %v546_v9 = vsub.f32 1.0, %v514_v41  ;;  %832 = vmatpush.msrb.mxu2 %v2277_v59  ;;  %v481_v30 = vmax.f32 %v449_v8, 0.0 }
  0x95   : > { %2803 = vst [vmem:[#allocation28_spill] sm:$0xff] %v2280_v11  ;;  %v917_v25 = vsub.f32 %v2270_v37, %v2771_v12  ;;  %v2296_v23 = vand.u32 4294901760, %v614_v55  ;;  %v356_v2 = vsub.f32 %v1952_v7, %v2284_v29  ;;  %v548_v26 = vsub.f32 1.0, %v516_v46 }
  0x96   : > { %2804 = vst [vmem:[#allocation29_spill] sm:$0xff] %v2284_v29  ;;  %v2773_v53 = vand.u32 4294901760, %v2287_v19  ;;  %987 = vmatpush.msra.mxu0 %v2287_v19  ;;  %v386_v3 = vand.u32 2147483647, %v354_v5  ;;  %v578_v18 = vmax.f32 %v546_v9, 0.0  ;;  %v513_v15 = vsub.f32 %v2244_v43, %v1950_v1 }
  0x97   : > { %2805 = vst [vmem:[#allocation30_spill] sm:$0xff] %v2296_v23  ;;  %v918_v35 = vand.u32 4294901760, %v917_v25  ;;  %v2305_v41 = vsub.f32 %v614_v55, %v2296_v23  ;;  %v388_v8 = vand.u32 2147483647, %v356_v2  ;;  %v580_v12 = vmax.f32 %v548_v26, 0.0  ;;  %1030 = vmatpush.msra.mxu1 %v2296_v23  ;;  %834 = vmatpush.msrb.mxu2 %v2296_v23 }
  0x98   : > { %v923_v7 = vsub.f32 %v2287_v19, %v2773_v53  ;;  %v418_v46 = vsub.f32 1.0, %v386_v3  ;;  %v545_v5 = vand.u32 2147483647, %v513_v15  ;;  %v383_v9 = vsub.f32 %v2159_v22, %v1977_v31 }
  0x99   : > { %919 = vmatpush.msrb.mxu3 %v918_v35  ;;  %v928_v1 = vand.u32 4294901760, %v2305_v41  ;;  %v420_v55 = vsub.f32 1.0, %v388_v8  ;;  %990 = vmatpush.msra.mxu0 %v2305_v41  ;;  %v511_v25 = vsub.f32 %v2244_v43, %v1957_v16  ;;  %v381_v2 = vsub.f32 %v2159_v22, %v1984_v40 }
  0x9a   : > { %v924_v26 = vand.u32 4294901760, %v923_v7  ;;  %v450_v44 = vmax.f32 %v418_v46, 0.0  ;;  %v577_v53 = vsub.f32 1.0, %v545_v5  ;;  %v415_v3 = vand.u32 2147483647, %v383_v9 }
  0x9b   : > { %v929_v31 = vsub.f32 %v2305_v41, %v928_v1  ;;  %v452_v15 = vmax.f32 %v420_v55, 0.0  ;;  %v543_v35 = vand.u32 2147483647, %v511_v25  ;;  %v413_v45 = vand.u32 2147483647, %v381_v2 }
  0x9c   : > { %925 = vmatpush.msrb.mxu3 %v924_v26  ;;  %v610_v8 = vmul.f32 %v578_v18, %v450_v44  ;;  %v609_v11 = vmax.f32 %v577_v53, 0.0  ;;  %v447_v58 = vsub.f32 1.0, %v415_v3  ;;  %v509_v16 = vsub.f32 %v2244_v43, %v1967_v24 }
  0x9d   : > { %v930_v23 = vand.u32 4294901760, %v929_v31  ;;  %v612_v40 = vmul.f32 %v580_v12, %v452_v15  ;;  %v575_v7 = vsub.f32 1.0, %v543_v35  ;;  %v445_v46 = vsub.f32 1.0, %v413_v45 }
  0x9e   : > { %v2325_v5 = vand.u32 4294901760, %v610_v8  ;;  %v641_v9 = vmul.f32 %v609_v11, %v481_v30  ;;  %v479_v29 = vmax.f32 %v447_v58, 0.0  ;;  %v541_v59 = vand.u32 2147483647, %v509_v16 }
  0x9f   : > { %931 = vmatpush.msrb.mxu3 %v930_v23  ;;  %v2327_v55 = vand.u32 4294901760, %v612_v40  ;;  %v607_v25 = vmax.f32 %v575_v7, 0.0  ;;  %v477_v2 = vmax.f32 %v445_v46, 0.0  ;;  %v379_v44 = vsub.f32 %v2159_v22, %v2001_v6 }
  0xa0   : > { %v2332_v53 = vsub.f32 %v610_v8, %v2325_v5  ;;  %v2334_v24 = vand.u32 4294901760, %v641_v9  ;;  %v573_v12 = vsub.f32 1.0, %v541_v59  ;;  %v507_v45 = vsub.f32 %v2244_v43, %v1988_v52 }
  0xa1   : > { %v2339_v58 = vsub.f32 %v612_v40, %v2327_v55  ;;  %1032 = vmatpush.msra.mxu1 %v2327_v55  ;;  %v639_v11 = vmul.f32 %v607_v25, %v479_v29  ;;  %836 = vmatpush.msrb.mxu2 %v2327_v55  ;;  %v411_v30 = vand.u32 2147483647, %v379_v44  ;;  %v377_v6 = vsub.f32 %v2159_v22, %v2047_v50 }
  0xa2   : > { %v940_v23 = vand.u32 4294901760, %v2332_v53  ;;  %v2347_v18 = vsub.f32 %v641_v9, %v2334_v24  ;;  %v605_v59 = vmax.f32 %v573_v12, 0.0  ;;  %v539_v26 = vand.u32 2147483647, %v507_v45 }
  0xa3   : > { %v934_v52 = vand.u32 4294901760, %v2339_v58  ;;  %993 = vmatpush.msra.mxu0 %v2339_v58  ;;  %1034 = vmatpush.msra.mxu1 %v2325_v5  ;;  %v2352_v29 = vand.u32 4294901760, %v639_v11  ;;  %v443_v3 = vsub.f32 1.0, %v411_v30  ;;  %v409_v31 = vand.u32 2147483647, %v377_v6 }
  0xa4   : > { %v941_v50 = vsub.f32 %v2332_v53, %v940_v23  ;;  %v1191_v15 = vand.u32 4294901760, %v2347_v18  ;;  %v637_v35 = vmul.f32 %v605_v59, %v477_v2  ;;  %838 = vmatpush.msrb.mxu2 %v2325_v5  ;;  %v571_v8 = vsub.f32 1.0, %v539_v26 }
  0xa5   : > { %v935_v16 = vsub.f32 %v2339_v58, %v934_v52  ;;  %996 = vmatpush.msra.mxu0 %v2332_v53  ;;  %v2364_v40 = vsub.f32 %v639_v11, %v2352_v29  ;;  %v2806_v7 = vand.u32 4294901760, %v2004_v14  ;;  %v475_v46 = vmax.f32 %v443_v3, 0.0  ;;  %v2834_v53 = vld [vmem:[#allocation29_spill] sm:$0xff] }
  0xa6   : > { %v441_v9 = vsub.f32 1.0, %v409_v31  ;;  %v942_v25 = vand.u32 4294901760, %v941_v50  ;;  %v1192_v2 = vsub.f32 %v2347_v18, %v1191_v15  ;;  %v2372_v44 = vand.u32 4294901760, %v637_v35 }
  0xa7   : > { %1045 = vmatpush.msra.mxu2 %v2806_v7  ;;  %1149 = vmatpush.msrb.mxu0 %v2334_v24  ;;  %v603_v12 = vmax.f32 %v571_v8, 0.0  ;;  %v936_v45 = vand.u32 4294901760, %v935_v16  ;;  %v1197_v30 = vand.u32 4294901760, %v2364_v40  ;;  %v2807_v11 = vand.u32 4294901760, %v2016_v32 }
  0xa8   : > { %v473_v14 = vmax.f32 %v441_v9, 0.0  ;;  %v505_v6 = vsub.f32 %v2244_v43, %v2021_v34  ;;  %v1193_v59 = vand.u32 4294901760, %v1192_v2  ;;  %v2381_v3 = vsub.f32 %v637_v35, %v2372_v44 }
  0xa9   : > { %1049 = vmatpush.msra.mxu2 %v2807_v11  ;;  %1151 = vmatpush.msrb.mxu0 %v2352_v29  ;;  %v635_v26 = vmul.f32 %v603_v12, %v475_v46  ;;  %v375_v31 = vsub.f32 %v2159_v22, %v2062_v63  ;;  %v1198_v32 = vsub.f32 %v2364_v40, %v1197_v30  ;;  %v2808_v8 = vand.u32 4294901760, %v2033_v42 }
  0xaa   : > { %937 = vmatpush.msrb.mxu3 %v936_v45  ;;  %v537_v50 = vand.u32 2147483647, %v505_v6  ;;  %v503_v34 = vsub.f32 %v2244_v43, %v2040_v47  ;;  %v373_v16 = vsub.f32 %v2159_v22, %v2073_v13  ;;  %1194 = vmatpush.msrb.mxu1 %v1193_v59  ;;  %v1203_v63 = vand.u32 4294901760, %v2381_v3 }
  0xab   : > { %1053 = vmatpush.msra.mxu2 %v2808_v8  ;;  %1153 = vmatpush.msrb.mxu0 %v2372_v44  ;;  %v2395_v35 = vand.u32 4294901760, %v635_v26  ;;  %v407_v7 = vand.u32 2147483647, %v375_v31  ;;  %v501_v46 = vsub.f32 %v2244_v43, %v2053_v56  ;;  %v1199_v42 = vand.u32 4294901760, %v1198_v32 }
  0xac   : > { %943 = vmatpush.msrb.mxu3 %v942_v25  ;;  %v569_v9 = vsub.f32 1.0, %v537_v50  ;;  %v535_v2 = vand.u32 2147483647, %v503_v34  ;;  %v2809_v47 = vand.u32 4294901760, %v2068_v17  ;;  %v405_v12 = vand.u32 2147483647, %v373_v16 }
  0xad   : > { %1155 = vmatpush.msrb.mxu0 %v2395_v35  ;;  %v1204_v13 = vsub.f32 %v2381_v3, %v1203_v63  ;;  %v2408_v45 = vsub.f32 %v635_v26, %v2395_v35  ;;  %v439_v56 = vsub.f32 1.0, %v407_v7  ;;  %v533_v25 = vand.u32 2147483647, %v501_v46  ;;  %1200 = vmatpush.msrb.mxu1 %v1199_v42 }
  0xae   : > { %1057 = vmatpush.msra.mxu2 %v2809_v47  ;;  %1112 = vmatpush.msra.mxu3 %v1999_v4  ;;  %v601_v11 = vmax.f32 %v569_v9, 0.0  ;;  %v567_v6 = vsub.f32 1.0, %v535_v2  ;;  %v437_v59 = vsub.f32 1.0, %v405_v12  ;;  %v2810_v17 = vand.u32 4294901760, %v2097_v62 }
  0xaf   : > { %v371_v4 = vsub.f32 %v2159_v22, %v2111_v38  ;;  %v1205_v31 = vand.u32 4294901760, %v1204_v13  ;;  %v1209_v32 = vand.u32 4294901760, %v2408_v45  ;;  %v471_v50 = vmax.f32 %v439_v56, 0.0 }
  0xb0   : > { %1061 = vmatpush.msra.mxu2 %v2810_v17  ;;  %1114 = vmatpush.msra.mxu3 %v2011_v20  ;;  %v565_v26 = vsub.f32 1.0, %v533_v25  ;;  %v633_v8 = vmul.f32 %v601_v11, %v473_v14  ;;  %v599_v34 = vmax.f32 %v567_v6, 0.0  ;;  %v469_v16 = vmax.f32 %v437_v59, 0.0 }
  0xb1   : > { %v403_v7 = vand.u32 2147483647, %v371_v4  ;;  %v2811_v46 = vand.u32 4294901760, %v2115_v39  ;;  %1206 = vmatpush.msrb.mxu1 %v1205_v31  ;;  %v1210_v62 = vsub.f32 %v2408_v45, %v1209_v32  ;;  %v499_v38 = vsub.f32 %v2244_v43, %v2088_v0 }
  0xb2   : > { %1116 = vmatpush.msra.mxu3 %v2018_v33  ;;  %v597_v20 = vmax.f32 %v565_v26, 0.0  ;;  %v369_v14 = vsub.f32 %v2159_v22, %v2130_v54  ;;  %v2426_v42 = vand.u32 4294901760, %v633_v8  ;;  %v631_v9 = vmul.f32 %v599_v34, %v471_v50  ;;  %v2816_v26 = vld [vmem:[#allocation11_spill] sm:$0xff] }
  0xb3   : > { %1065 = vmatpush.msra.mxu2 %v2811_v46  ;;  %v435_v2 = vsub.f32 1.0, %v403_v7  ;;  %v497_v39 = vsub.f32 %v2244_v43, %v2104_v28  ;;  %v2812_v33 = vand.u32 4294901760, %v2134_v57  ;;  %v1211_v47 = vand.u32 4294901760, %v1210_v62 }
  0xb4   : > { %1118 = vmatpush.msra.mxu3 %v2060_v61  ;;  %v629_v12 = vmul.f32 %v597_v20, %v469_v16  ;;  %v531_v13 = vand.u32 2147483647, %v499_v38  ;;  %v401_v56 = vand.u32 2147483647, %v369_v14  ;;  %1157 = vmatpush.msrb.mxu0 %v2426_v42  ;;  %v2434_v0 = vand.u32 4294901760, %v631_v9  ;;  %v2818_v38 = vld [vmem:[#allocation12_spill] sm:$0xff] }
  0xb5   : > { %1069 = vmatpush.msra.mxu2 %v2812_v33  ;;  %v2437_v54 = vsub.f32 %v633_v8, %v2426_v42  ;;  %v467_v25 = vmax.f32 %v435_v2, 0.0  ;;  %v529_v11 = vand.u32 2147483647, %v497_v39  ;;  %v2813_v28 = vand.u32 4294901760, %v2174_v10  ;;  %1212 = vmatpush.msrb.mxu1 %v1211_v47  ;;  %v2819_v39 = vld [vmem:[#allocation16_spill] sm:$0xff] }
  0xb6   : > { %1120 = vmatpush.msra.mxu3 %v2086_v60  ;;  %v2442_v61 = vand.u32 4294901760, %v629_v12  ;;  %v563_v57 = vsub.f32 1.0, %v531_v13  ;;  %v433_v6 = vsub.f32 1.0, %v401_v56  ;;  %v367_v59 = vsub.f32 %v2159_v22, %v2147_v36  ;;  %1159 = vmatpush.msrb.mxu0 %v2434_v0  ;;  %v2814_v60 = vld [vmem:[#allocation17_spill] sm:$0xff] }
  0xb7   : > { %1073 = vmatpush.msra.mxu2 %v2813_v28  ;;  %v1215_v17 = vand.u32 4294901760, %v2437_v54  ;;  %v2449_v4 = vsub.f32 %v631_v9, %v2434_v0  ;;  %v561_v31 = vsub.f32 1.0, %v529_v11  ;;  %v495_v10 = vsub.f32 %v2244_v43, %v2123_v48 }
  0xb8   : > { %v2815_v50 = vand.u32 4294901760, %v2814_v60  ;;  %1122 = vmatpush.msra.mxu3 %v2816_v26  ;;  %v595_v8 = vmax.f32 %v563_v57, 0.0  ;;  %v2457_v34 = vsub.f32 %v629_v12, %v2442_v61  ;;  %v465_v36 = vmax.f32 %v433_v6, 0.0  ;;  %1161 = vmatpush.msrb.mxu0 %v2442_v61  ;;  %v2822_v60 = vld [vmem:[#allocation13_spill] sm:$0xff]  ;;  %v2824_v26 = vld [vmem:[#allocation15_spill] sm:$0xff] }
  0xb9   : > { %v399_v16 = vand.u32 2147483647, %v367_v59  ;;  %v1216_v7 = vsub.f32 %v2437_v54, %v1215_v17  ;;  %v1221_v46 = vand.u32 4294901760, %v2449_v4  ;;  %v593_v48 = vmax.f32 %v561_v31, 0.0 }
  0xba   : > { %1077 = vmatpush.msra.mxu2 %v2815_v50  ;;  %v527_v62 = vand.u32 2147483647, %v495_v10  ;;  %v2817_v20 = vand.u32 4294901760, %v2204_v27  ;;  %1124 = vmatpush.msra.mxu3 %v2818_v38  ;;  %v627_v14 = vmul.f32 %v595_v8, %v467_v25  ;;  %v1227_v9 = vand.u32 4294901760, %v2457_v34  ;;  %v2821_v27 = vld [vmem:[#allocation14_spill] sm:$0xff] }
  0xbb   : > { %v431_v2 = vsub.f32 1.0, %v399_v16  ;;  %v365_v33 = vsub.f32 %v2159_v22, %v2819_v39  ;;  %v1217_v47 = vand.u32 4294901760, %v1216_v7  ;;  %v1222_v12 = vsub.f32 %v2449_v4, %v1221_v46  ;;  %v2827_v39 = vld [vmem:[#allocation18_spill] sm:$0xff] }
  0xbc   : > { %1081 = vmatpush.msra.mxu2 %v2817_v20  ;;  %v625_v13 = vmul.f32 %v593_v48, %v465_v36  ;;  %v559_v56 = vsub.f32 1.0, %v527_v62  ;;  %v2820_v11 = vand.u32 4294901760, %v2247_v51  ;;  %1126 = vmatpush.msra.mxu3 %v2821_v27  ;;  %v2476_v28 = vand.u32 4294901760, %v627_v14 }
  0xbd   : > { %v1228_v25 = vsub.f32 %v2457_v34, %v1227_v9  ;;  %v463_v57 = vmax.f32 %v431_v2, 0.0  ;;  %v397_v6 = vand.u32 2147483647, %v365_v33  ;;  %1218 = vmatpush.msrb.mxu1 %v1217_v47  ;;  %v1223_v59 = vand.u32 4294901760, %v1222_v12  ;;  %v2828_v47 = vld [vmem:[#allocation22_spill] sm:$0xff] }
  0xbe   : > { %1085 = vmatpush.msra.mxu2 %v2820_v11  ;;  %v2481_v31 = vand.u32 4294901760, %v625_v13  ;;  %v591_v10 = vmax.f32 %v559_v56, 0.0  ;;  %v493_v50 = vsub.f32 %v2244_v43, %v2822_v60  ;;  %v2823_v51 = vand.u32 4294901760, %v2270_v37  ;;  %1128 = vmatpush.msra.mxu3 %v2824_v26  ;;  %v2825_v37 = vld [vmem:[#allocation19_spill] sm:$0xff] }
  0xbf   : > { %1163 = vmatpush.msrb.mxu0 %v2476_v28  ;;  %v1229_v8 = vand.u32 4294901760, %v1228_v25  ;;  %v2490_v36 = vsub.f32 %v627_v14, %v2476_v28  ;;  %v429_v16 = vsub.f32 1.0, %v397_v6  ;;  %v363_v7 = vsub.f32 %v2159_v22, %v2218_v21  ;;  %1224 = vmatpush.msrb.mxu1 %v1223_v59  ;;  %v2829_v25 = vld [vmem:[#allocation23_spill] sm:$0xff]  ;;  %v2830_v59 = vld [vmem:[#allocation20_spill] sm:$0xff] }
  0xc0   : > { %1089 = vmatpush.msra.mxu2 %v2823_v51  ;;  %v623_v48 = vmul.f32 %v591_v10, %v463_v57  ;;  %v2495_v62 = vsub.f32 %v625_v13, %v2481_v31  ;;  %v525_v20 = vand.u32 2147483647, %v493_v50  ;;  %v491_v38 = vsub.f32 %v2244_v43, %v2825_v37  ;;  %1130 = vmatpush.msra.mxu3 %v2827_v39 }
  0xc1   : > { %v2826_v2 = vand.u32 4294901760, %v2287_v19  ;;  %1165 = vmatpush.msrb.mxu0 %v2481_v31  ;;  %v1233_v14 = vand.u32 4294901760, %v2490_v36  ;;  %v461_v33 = vmax.f32 %v429_v16, 0.0  ;;  %v395_v21 = vand.u32 2147483647, %v363_v7  ;;  %1230 = vmatpush.msrb.mxu1 %v1229_v8 }
  0xc2   : > { %v361_v12 = vsub.f32 %v2159_v22, %v2828_v47  ;;  %v2506_v13 = vand.u32 4294901760, %v623_v48  ;;  %v1239_v56 = vand.u32 4294901760, %v2495_v62  ;;  %v557_v11 = vsub.f32 1.0, %v525_v20  ;;  %1132 = vmatpush.msra.mxu3 %v2829_v25 }
  0xc3   : > { %1093 = vmatpush.msra.mxu2 %v2826_v2  ;;  %v523_v27 = vand.u32 2147483647, %v491_v38  ;;  %v1234_v19 = vsub.f32 %v2490_v36, %v1233_v14  ;;  %v427_v57 = vsub.f32 1.0, %v395_v21  ;;  %v489_v10 = vsub.f32 %v2244_v43, %v2830_v59 }
  0xc4   : > { %v393_v6 = vand.u32 2147483647, %v361_v12  ;;  %1167 = vmatpush.msrb.mxu0 %v2506_v13  ;;  %v1240_v60 = vsub.f32 %v2495_v62, %v1239_v56  ;;  %v589_v50 = vmax.f32 %v557_v11, 0.0  ;;  %v2522_v41 = vsub.f32 %v623_v48, %v2506_v13  ;;  %1134 = vmatpush.msra.mxu3 %v2262_v49  ;;  %v2831_v48 = vld [vmem:[#allocation27_spill] sm:$0xff]  ;;  %v2833_v49 = vld [vmem:[#allocation21_spill] sm:$0xff]  ;;  %v2835_v11 = vld [vmem:[#allocation30_spill] sm:$0xff] }
  0xc5   : > { %1097 = vmatpush.msra.mxu2 %v928_v1  ;;  %v555_v1 = vsub.f32 1.0, %v523_v27  ;;  %v1235_v51 = vand.u32 4294901760, %v1234_v19  ;;  %v459_v26 = vmax.f32 %v427_v57, 0.0  ;;  %v521_v16 = vand.u32 2147483647, %v489_v10  ;;  %v2836_v57 = vld [vmem:[#allocation26_spill] sm:$0xff] }
  0xc6   : > { %v425_v8 = vsub.f32 1.0, %v393_v6  ;;  %v1241_v7 = vand.u32 4294901760, %v1240_v60  ;;  %v621_v20 = vmul.f32 %v589_v50, %v461_v33  ;;  %v1245_v37 = vand.u32 4294901760, %v2522_v41  ;;  %1136 = vmatpush.msra.mxu3 %v2831_v48  ;;  %v2837_v48 = vld [vmem:[#allocation28_spill] sm:$0xff] }
  0xc7   : > { %1101 = vmatpush.msra.mxu2 %v934_v52  ;;  %v587_v38 = vmax.f32 %v555_v1, 0.0  ;;  %1236 = vmatpush.msrb.mxu1 %v1235_v51  ;;  %v553_v58 = vsub.f32 1.0, %v521_v16  ;;  %v2832_v52 = vld [vmem:[#allocation24_spill] sm:$0xff]  ;;  %v487_v21 = vsub.f32 %v2244_v43, %v2833_v49  ;;  %v485_v6 = vsub.f32 %v2244_v43, %v2836_v57 }
  0xc8   : > { %v457_v2 = vmax.f32 %v425_v8, 0.0  ;;  %v359_v39 = vsub.f32 %v2159_v22, %v2832_v52  ;;  %v2535_v47 = vand.u32 4294901760, %v621_v20  ;;  %v1246_v33 = vsub.f32 %v2522_v41, %v1245_v37  ;;  %1138 = vmatpush.msra.mxu3 %v2835_v11 }
  0xc9   : > { %1105 = vmatpush.msra.mxu2 %v940_v23  ;;  %v619_v12 = vmul.f32 %v587_v38, %v459_v26  ;;  %v357_v23 = vsub.f32 %v2159_v22, %v2834_v53  ;;  %1242 = vmatpush.msrb.mxu1 %v1241_v7  ;;  %v585_v27 = vmax.f32 %v553_v58, 0.0  ;;  %v519_v25 = vand.u32 2147483647, %v487_v21 }
  0xca   : > { %v391_v19 = vand.u32 2147483647, %v359_v39  ;;  %1169 = vmatpush.msrb.mxu0 %v2535_v47  ;;  %v1247_v59 = vand.u32 4294901760, %v1246_v33  ;;  %v2549_v60 = vsub.f32 %v621_v20, %v2535_v47  ;;  %1140 = vmatpush.msra.mxu3 %v2327_v55  ;;  %v517_v8 = vand.u32 2147483647, %v485_v6 }
  0xcb   : > { %v2546_v10 = vand.u32 4294901760, %v619_v12  ;;  %v389_v50 = vand.u32 2147483647, %v357_v23  ;;  %v617_v1 = vmul.f32 %v585_v27, %v457_v2  ;;  %v551_v26 = vsub.f32 1.0, %v519_v25  ;;  %v2838_v23 = vld [vmem:[#allocation25_spill] sm:$0xff] }
  0xcc   : > { %v423_v51 = vsub.f32 1.0, %v391_v19  ;;  %1248 = vmatpush.msrb.mxu1 %v1247_v59  ;;  %v1251_v16 = vand.u32 4294901760, %v2549_v60  ;;  %v355_v20 = vsub.f32 %v2159_v22, %v2837_v48  ;;  %1142 = vmatpush.msra.mxu3 %v2325_v5  ;;  %v549_v55 = vsub.f32 1.0, %v517_v8 }
  0xcd   : > { %1171 = vmatpush.msrb.mxu0 %v2546_v10  ;;  %v2555_v7 = vsub.f32 %v619_v12, %v2546_v10  ;;  %v421_v38 = vsub.f32 1.0, %v389_v50  ;;  %v2559_v58 = vand.u32 4294901760, %v617_v1  ;;  %v583_v52 = vmax.f32 %v551_v26, 0.0  ;;  %v703_v50 = vpop.f32.mrf.mxu1 }
  0xce   : > { %v455_v2 = vmax.f32 %v423_v51, 0.0  ;;  %v1252_v39 = vsub.f32 %v2549_v60, %v1251_v16  ;;  %v387_v33 = vand.u32 2147483647, %v355_v20  ;;  %v581_v53 = vmax.f32 %v549_v55, 0.0 }
  0xcf   : > { %v1257_v49 = vand.u32 4294901760, %v2555_v7  ;;  %v453_v21 = vmax.f32 %v421_v38, 0.0  ;;  %1173 = vmatpush.msrb.mxu0 %v2559_v58  ;;  %v2568_v22 = vsub.f32 %v617_v1, %v2559_v58  ;;  %v483_v11 = vsub.f32 %v2244_v43, %v2838_v23 }
  0xd0   : > { %v615_v12 = vmul.f32 %v583_v52, %v455_v2  ;;  %v1253_v5 = vand.u32 4294901760, %v1252_v39  ;;  %v419_v19 = vsub.f32 1.0, %v387_v33 }
  0xd1   : > { %v1258_v27 = vsub.f32 %v2555_v7, %v1257_v49  ;;  %v1263_v57 = vand.u32 4294901760, %v2568_v22  ;;  %v613_v6 = vmul.f32 %v581_v53, %v453_v21  ;;  %v515_v59 = vand.u32 2147483647, %v483_v11 }
  0xd2   : > { %v2575_v25 = vand.u32 4294901760, %v615_v12  ;;  %1254 = vmatpush.msrb.mxu1 %v1253_v5  ;;  %v451_v51 = vmax.f32 %v419_v19, 0.0 }
  0xd3   : > { %v1259_v1 = vand.u32 4294901760, %v1258_v27  ;;  %v1264_v43 = vsub.f32 %v2568_v22, %v1263_v57  ;;  %v2582_v26 = vand.u32 4294901760, %v613_v6  ;;  %v547_v38 = vsub.f32 1.0, %v515_v59 }
  0xd4   : > { %1175 = vmatpush.msrb.mxu0 %v2575_v25  ;;  %v2585_v8 = vsub.f32 %v615_v12, %v2575_v25 }
  0xd5   : > { %v672_v48 = vpop.f32.mrf.mxu0  ;;  %v729_v20 = vpop.f32.mrf.mxu2  ;;  %1260 = vmatpush.msrb.mxu1 %v1259_v1  ;;  %v1265_v52 = vand.u32 4294901760, %v1264_v43  ;;  %v579_v39 = vmax.f32 %v547_v38, 0.0  ;;  %v2590_v21 = vsub.f32 %v613_v6, %v2582_v26 }
  0xd6   : > { %v704_v2 = vadd.f32 %v703_v50, %v672_v48  ;;  %1177 = vmatpush.msrb.mxu0 %v2582_v26  ;;  %v1269_v55 = vand.u32 4294901760, %v2585_v8  ;;  %v804_v1 = vpop.f32.mrf.mxu1 }
  0xd7   : > { %1266 = vmatpush.msrb.mxu1 %v1265_v52  ;;  %v611_v53 = vmul.f32 %v579_v39, %v451_v51  ;;  %v754_v23 = vpop.f32.mrf.mxu3  ;;  %v1275_v11 = vand.u32 4294901760, %v2590_v21 }
  0xd8   : > { %v730_v33 = vadd.f32 %v729_v20, %v704_v2  ;;  %v1270_v12 = vsub.f32 %v2585_v8, %v1269_v55 }
  0xd9   : > { %v2596_v27 = vand.u32 4294901760, %v611_v53  ;;  %v1276_v19 = vsub.f32 %v2590_v21, %v1275_v11 }
  0xda   : > { %v1271_v5 = vand.u32 4294901760, %v1270_v12  ;;  %v755_v59 = vadd.f32 %v754_v23, %v730_v33 }
  0xdb   : > { %1179 = vmatpush.msrb.mxu0 %v2596_v27  ;;  %v2603_v6 = vsub.f32 %v611_v53, %v2596_v27  ;;  %v1277_v51 = vand.u32 4294901760, %v1276_v19 }
  0xdc   : > { %1272 = vmatpush.msrb.mxu1 %v1271_v5 }
  0xdd   : > { %v781_v50 = vpop.f32.mrf.mxu0  ;;  %v1281_v38 = vand.u32 4294901760, %v2603_v6 }
  0xde   : > { %v782_v43 = vadd.f32 %v781_v50, %v755_v59  ;;  %1278 = vmatpush.msrb.mxu1 %v1277_v51 }
  0xdf   : > { %v1282_v20 = vsub.f32 %v2603_v6, %v1281_v38 }
  0xe0   : > { %v805_v48 = vadd.f32 %v804_v1, %v782_v43 }
  0xe1   : > { %v1283_v52 = vand.u32 4294901760, %v1282_v20 }
  0xe2   : > { %v2609_v2 = vand.u32 4294901760, %v805_v48 }
  0xe3   : > { %1284 = vmatpush.msrb.mxu1 %v1283_v52 }
  0xe4   : > { %v2612_v39 = vsub.f32 %v805_v48, %v2609_v2  ;;  %945 = vmatmul.f32.vlgmr.msrb.gmra.mxu3 %v2609_v2 }
  0xe5   : > { %1345 = vmatpush.msrb.mxu3 %v2334_v24 }
  0xe6   : > { %999 = vmatmul.f32.vlgmr.msra.gmra.mxu0 %v2612_v39  ;;  %v2618_v33 = vand.u32 4294901760, %v2612_v39 }
  0xe7   : > { %1347 = vmatpush.msrb.mxu3 %v2352_v29  ;;  %1386 = vmatpush.msra.mxu0 %v1191_v15 }
  0xe8   : > { %1038 = vmatmul.f32.vlgmr.msra.gmra.mxu1 %v2618_v33  ;;  %v842_v12 = vsub.f32 %v2612_v39, %v2618_v33 }
  0xe9   : > { %1349 = vmatpush.msrb.mxu3 %v2372_v44  ;;  %1390 = vmatpush.msra.mxu0 %v1197_v30 }
  0xea   : > { %1453 = vmatpush.msra.mxu1 %v2334_v24  ;;  %v843_v53 = vand.u32 4294901760, %v842_v12 }
  0xeb   : > { %1351 = vmatpush.msrb.mxu3 %v2395_v35  ;;  %1394 = vmatpush.msra.mxu0 %v1203_v63 }
  0xec   : > { %1455 = vmatpush.msra.mxu1 %v2352_v29  ;;  %844 = vmatmul.f32.vlgmr.msrb.gmra.mxu2 %v843_v53 }
  0xed   : > { %1144 = vmatmul.f32.vlgmr.msra.gmra.mxu3 %v2609_v2  ;;  %1292 = vmatpush.msrb.mxu2 %v2347_v18 }
  0xee   : > { %1353 = vmatpush.msrb.mxu3 %v2426_v42  ;;  %1398 = vmatpush.msra.mxu0 %v1209_v32 }
  0xef   : > { %1457 = vmatpush.msra.mxu1 %v2372_v44  ;;  %1185 = vmatmul.f32.vlgmr.msrb.gmra.mxu0 %v843_v53 }
  0xf0   : > { %1295 = vmatpush.msrb.mxu2 %v2364_v40  ;;  %1355 = vmatpush.msrb.mxu3 %v2434_v0 }
  0xf1   : > { %1402 = vmatpush.msra.mxu0 %v1215_v17  ;;  %1459 = vmatpush.msra.mxu1 %v2395_v35 }
  0xf2   : > { %1286 = vmatmul.f32.vlgmr.msrb.gmra.mxu1 %v2609_v2  ;;  %1298 = vmatpush.msrb.mxu2 %v2381_v3 }
  0xf3   : > { %1357 = vmatpush.msrb.mxu3 %v2442_v61  ;;  %1406 = vmatpush.msra.mxu0 %v1221_v46 }
  0xf4   : > { %1461 = vmatpush.msra.mxu1 %v2426_v42  ;;  %1301 = vmatpush.msrb.mxu2 %v2408_v45 }
  0xf5   : > { %1359 = vmatpush.msrb.mxu3 %v2476_v28  ;;  %1410 = vmatpush.msra.mxu0 %v1227_v9 }
  0xf6   : > { %1463 = vmatpush.msra.mxu1 %v2434_v0  ;;  %1107 = vmatmul.f32.vlgmr.msra.gmra.mxu2 %v2609_v2 }
  0xf7   : > { %1304 = vmatpush.msrb.mxu2 %v2437_v54  ;;  %1361 = vmatpush.msrb.mxu3 %v2481_v31 }
  0xf8   : > { %1414 = vmatpush.msra.mxu0 %v1233_v14  ;;  %1465 = vmatpush.msra.mxu1 %v2442_v61 }
  0xf9   : > { %1307 = vmatpush.msrb.mxu2 %v2449_v4  ;;  %1363 = vmatpush.msrb.mxu3 %v2506_v13 }
  0xfa   : > { %1418 = vmatpush.msra.mxu0 %v1239_v56  ;;  %1467 = vmatpush.msra.mxu1 %v2476_v28 }
  0xfb   : > { %1310 = vmatpush.msrb.mxu2 %v2457_v34  ;;  %1365 = vmatpush.msrb.mxu3 %v2535_v47 }
  0xfc   : > { %1422 = vmatpush.msra.mxu0 %v1245_v37  ;;  %1469 = vmatpush.msra.mxu1 %v2481_v31 }
  0xfd   : > { %1313 = vmatpush.msrb.mxu2 %v2490_v36  ;;  %1367 = vmatpush.msrb.mxu3 %v2546_v10 }
  0xfe   : > { %1426 = vmatpush.msra.mxu0 %v1251_v16  ;;  %1471 = vmatpush.msra.mxu1 %v2506_v13 }
  0xff   : > { %1316 = vmatpush.msrb.mxu2 %v2495_v62  ;;  %1369 = vmatpush.msrb.mxu3 %v2559_v58 }
 0x100   : > { %1430 = vmatpush.msra.mxu0 %v1257_v49  ;;  %1473 = vmatpush.msra.mxu1 %v2535_v47 }
 0x101   : > { %1319 = vmatpush.msrb.mxu2 %v2522_v41  ;;  %1371 = vmatpush.msrb.mxu3 %v2575_v25 }
 0x102   : > { %1434 = vmatpush.msra.mxu0 %v1263_v57  ;;  %1475 = vmatpush.msra.mxu1 %v2546_v10 }
 0x103   : > { %1322 = vmatpush.msrb.mxu2 %v2549_v60  ;;  %1373 = vmatpush.msrb.mxu3 %v2582_v26 }
 0x104   : > { %1438 = vmatpush.msra.mxu0 %v1269_v55  ;;  %1477 = vmatpush.msra.mxu1 %v2559_v58 }
 0x105   : > { %1325 = vmatpush.msrb.mxu2 %v2555_v7  ;;  %1375 = vmatpush.msrb.mxu3 %v2596_v27 }
 0x106   : > { %1442 = vmatpush.msra.mxu0 %v1275_v11  ;;  %1479 = vmatpush.msra.mxu1 %v2575_v25 }
 0x107   : > { %1379 = vmatmul.f32.vlgmr.msrb.gmra.mxu3 %v2618_v33  ;;  %1328 = vmatpush.msrb.mxu2 %v2568_v22 }
 0x108   : > { %1446 = vmatpush.msra.mxu0 %v1281_v38  ;;  %1481 = vmatpush.msra.mxu1 %v2582_v26 }
 0x109   : > { %1448 = vmatmul.f32.vlgmr.msra.gmra.mxu0 %v2609_v2  ;;  %1331 = vmatpush.msrb.mxu2 %v2585_v8 }
 0x10a   : > { %1483 = vmatpush.msra.mxu1 %v2596_v27 }
 0x10b   : > { %1485 = vmatmul.f32.vlgmr.msra.gmra.mxu1 %v2609_v2  ;;  %1334 = vmatpush.msrb.mxu2 %v2590_v21 }
 0x10d   : > { %1337 = vmatpush.msrb.mxu2 %v2603_v6 }
 0x10e   : > { %1340 = vmatmul.f32.vlgmr.msrb.gmra.mxu2 %v2612_v39 }
 0x163   : > { %v1000_v15 = vpop.f32.mrf.mxu0 }
 0x165   : > { %v1039_v44 = vpop.f32.mrf.mxu1 }
 0x167   : > { %v946_v24 = vpop.f32.mrf.mxu3 }
 0x16c   : > { %v1186_v32 = vpop.f32.mrf.mxu0 }
 0x16f   : > { %v845_v18 = vpop.f32.mrf.mxu2  ;;  %v1287_v42 = vpop.f32.mrf.mxu1 }
 0x170   : > { %v947_v29 = vadd.f32 %v946_v24, %v845_v18  ;;  %v1145_v63 = vpop.f32.mrf.mxu3  ;;  %v1288_v0 = vadd.f32 %v1287_v42, %v1186_v32 }
 0x172   : > { %v1001_v40 = vadd.f32 %v1000_v15, %v947_v29 }
 0x174   : > { %v1040_v30 = vadd.f32 %v1039_v44, %v1001_v40 }
 0x179   : > { %v1108_v3 = vpop.f32.mrf.mxu2 }
 0x17a   : > { %v1109_v35 = vadd.f32 %v1108_v3, %v1040_v30 }
 0x17c   : > { %v1146_v45 = vadd.f32 %v1145_v63, %v1109_v35 }
 0x17e   : > { %1489 = vst [vmem:[%s177_s17] sm:$0xff] %v1146_v45 }
 0x186   : > { %v1449_v34 = vpop.f32.mrf.mxu0 }
 0x188   : > { %v1486_v9 = vpop.f32.mrf.mxu1 }
 0x18a   : > { %v1380_v17 = vpop.f32.mrf.mxu3 }
 0x191   : > { %v1341_v54 = vpop.f32.mrf.mxu2 }
 0x192   : > { %v1342_v61 = vadd.f32 %v1341_v54, %v1288_v0 }
 0x194   : > { %v1381_v4 = vadd.f32 %v1380_v17, %v1342_v61 }
 0x196   : > { %v1450_v46 = vadd.f32 %v1449_v34, %v1381_v4 }
 0x198   : > { %v1487_v28 = vadd.f32 %v1486_v9, %v1450_v46 }
 0x19a   : > { %1490 = vst [vmem:[%s177_s17 + $0x8] sm:$0xff] %v1487_v28 }
 0x19b   : > { %1745 = shalt.err (!%p1742_p8)
}
 0x19c   : > { %1620 = dma.vmem_to_hbm [thread:$0]  (%p1860_p11), %s1506_s29, 256, %s1508_s30, %s1492_s13  }
 0x19d PF: > { %s1519_s4 = sand.u32 1, %s1776_s9   ;;  %p2839_p9 = scmp.ge.s32.totalorder %s1788_s12, 2 }
 0x19e   : > { %s1520_s8 = scalar_lea.sflag [#allocation4], %s1519_s4 }
 0x19f   : > { %p1631_p10 = pnand %p2839_p9, %p1864_p12 }
 0x1a1   : > { %p1632_p1 = pneg %p1631_p10 }
 0x1a3   : > { %1771 = dma.done.wait (%p1632_p1), %s1520_s8, 256  }
 0x1a4   : > { %1773 = vsyncadd (%p1632_p1), %s1520_s8, 4294967040  ;;  %p16_p2 = scmp.ge.s32.totalorder %s1833_s15, 4   ;;  %s2840_s9 = smov %s1780_s10 }
 0x1a5   : > { %s2841_s10 = smov %s1784_s11  ;;  %s2842_s11 = smov %s1845_s18 }
 0x1a6   : > { %s2843_s12 = smov %s1833_s15  ;;  %18 = sbr.rel (!%p16_p2) target bundleno = 6 (0x6), region = 78 }
 0x1ab   :  { %1526 = vsyncpa [#allocation3], 1 }
 0x1ac   :  { %1528 = vsyncpa [#allocation3 + $0x1], 1 }
 0x1ad   :  { %1529 = vsyncpa [#allocation4], 1 }
 0x1ae   :  { %1531 = vsyncpa [#allocation4 + $0x1], 1 }
 0x1af   :  { %1532 = vsyncpa [#allocation5], 1 }
 0x1b0   :  { %1534 = vsyncpa [#allocation5 + $0x1], 1 }

</bundles_post_ra>
